<compile_context>
chip_gen: v7x
topology: tpu7x:2x2x1
jax: 0.10.0
libtpu: 0.0.40
codegen_flags: <defaults>
</compile_context>

<pallas_src>
import functools
import math

import jax
import jax.numpy as jnp
from jax.experimental import pallas as pl
from jax.experimental.pallas import tpu as pltpu

# ----------------------------- config (small) -----------------------------
VOCAB = 256
HIDDEN = 64
N_HEADS = 4
HEAD_DIM = HIDDEN // N_HEADS          # 16
INTER = 128                           # MLP intermediate size
N_LAYERS = 2
BATCH = 2
SEQ = 8
PAD_TOKEN = 0
RMS_EPS = 1e-5
ROPE_THETA = 10000.0
INIT_STD = 0.02
# Kept float32 to match the PyTorch reference numerics; the kernel is
# launch/step-overhead bound at this size so bf16 storage buys ~nothing here.
DTYPE = jnp.float32

M_ROWS = BATCH * SEQ                  # 16 flattened token rows


# ----------------------------- fused kernel helpers -----------------------
def _rms_norm(x, w_ref, eps):
    # x: (M, D) f32, w_ref: (1, D)
    w = w_ref[...].astype(jnp.float32)
    var = jnp.mean(x * x, axis=-1, keepdims=True)
    return x * jax.lax.rsqrt(var + eps) * w


def _rotate_half(u):
    # u: (M, Dh) -> [-u2, u1]  (standard Llama "rotate_half" convention)
    half = u.shape[-1] // 2
    return jnp.concatenate([-u[:, half:], u[:, :half]], axis=-1)


# ----------------------------- fused whole-model kernel -------------------
def _llm_fused_kernel(eps,
                      x_emb_ref, cos_ref, sin_ref, bias_ref,
                      attn_norm_ref, wqkv_ref, wo_ref,
                      mlp_norm_ref, wgu_ref, wd_ref,
                      final_norm_ref, out_w_ref,
                      logits_ref,
                      x_res_ref):
    """One grid step == one transformer layer; residual stream stays in VMEM."""
    layer = pl.program_id(0)
    last_layer = pl.num_programs(0) - 1

    # Seed the residual stream from the token embeddings on the first step.
    @pl.when(layer == 0)
    def _():
        x_res_ref[...] = x_emb_ref[...].astype(jnp.float32)

    x = x_res_ref[...]                                   # (M, D) f32

    cos = cos_ref[...].astype(jnp.float32)               # (M, Dh)
    sin = sin_ref[...].astype(jnp.float32)
    bias = bias_ref[...]                                 # (M, M) additive mask, f32
    scale = 1.0 / math.sqrt(HEAD_DIM)

    # ---------------- attention sub-block ----------------
    h = _rms_norm(x, attn_norm_ref[0], eps)              # (M, D)
    # Fused Q|K|V projection: one MXU pass over a (D, 3D) weight slab.
    qkv = jnp.dot(h, wqkv_ref[0].astype(jnp.float32),
                  preferred_element_type=jnp.float32)    # (M, 3D)

    head_outs = []
    for hh in range(N_HEADS):                            # static, unrolled
        lo = hh * HEAD_DIM
        q_h = qkv[:, lo:lo + HEAD_DIM]                               # (M, Dh)
        k_h = qkv[:, HIDDEN + lo:HIDDEN + lo + HEAD_DIM]             # (M, Dh)
        v_h = qkv[:, 2 * HIDDEN + lo:2 * HIDDEN + lo + HEAD_DIM]     # (M, Dh)

        # RoPE applied in-VMEM (no HBM round trip, no host-side transpose).
        q_h = q_h * cos + _rotate_half(q_h) * sin
        k_h = k_h * cos + _rotate_half(k_h) * sin

        # Scores over all B*S rows at once; the additive bias encodes both the
        # causal mask and the batch block-diagonal structure.
        s = jax.lax.dot_general(
            q_h, k_h, (((1,), (1,)), ((), ())),
            preferred_element_type=jnp.float32) * scale + bias        # (M, M)
        s = s - jnp.max(s, axis=-1, keepdims=True)
        p = jnp.exp(s)
        p = p * pl.reciprocal(jnp.sum(p, axis=-1, keepdims=True), approx=True)
        head_outs.append(jnp.dot(p, v_h, preferred_element_type=jnp.float32))

    attn = jnp.concatenate(head_outs, axis=-1)           # (M, D)
    x = x + jnp.dot(attn, wo_ref[0].astype(jnp.float32),
                    preferred_element_type=jnp.float32)

    # ---------------- MLP sub-block (fused SwiGLU) ----------------
    h2 = _rms_norm(x, mlp_norm_ref[0], eps)
    gu = jnp.dot(h2, wgu_ref[0].astype(jnp.float32),
                 preferred_element_type=jnp.float32)     # (M, 2F)
    g = gu[:, :INTER]
    u = gu[:, INTER:]
    mlp_h = jax.nn.silu(g) * u                           # (M, F)
    x = x + jnp.dot(mlp_h, wd_ref[0].astype(jnp.float32),
                    preferred_element_type=jnp.float32)

    x_res_ref[...] = x                                   # carry residual stream

    # ---------------- final norm + vocab head (last layer only) ----------
    @pl.when(layer == last_layer)
    def _():
        hf = _rms_norm(x, final_norm_ref, eps)
        logits_ref[...] = jnp.dot(
            hf, out_w_ref[...].astype(jnp.float32),
            preferred_element_type=jnp.float32).astype(logits_ref.dtype)


# ----------------------------- RoPE / mask (trace-time glue) ---------------
# TODO(synk): exact torchtune RotaryEmbedding may use interleaved pairs; here
# we use the standard half-split ("rotate_half") Llama convention.
def rope_freqs(seq_len, head_dim, theta=ROPE_THETA):
    inv_freq = 1.0 / (theta ** (jnp.arange(0, head_dim, 2, dtype=jnp.float32) / head_dim))
    pos = jnp.arange(seq_len, dtype=jnp.float32)
    ang = pos[:, None] * inv_freq[None, :]                            # (S, Dh/2)
    cos = jnp.concatenate([jnp.cos(ang), jnp.cos(ang)], axis=-1)      # (S, Dh)
    sin = jnp.concatenate([jnp.sin(ang), jnp.sin(ang)], axis=-1)
    return cos, sin


def build_attn_bias(batch, seq):
    """Additive (B*S, B*S) mask: causal within a sequence, -inf across batches."""
    m = batch * seq
    row = jnp.arange(m)
    col = jnp.arange(m)
    same_batch = (row[:, None] // seq) == (col[None, :] // seq)
    causal = col[None, :] <= row[:, None]
    allowed = same_batch & causal
    return jnp.where(allowed, 0.0, -1e30).astype(jnp.float32)


# ----------------------------- model -----------------------------
def init_params(key):
    keys = jax.random.split(key, 2 + N_LAYERS)
    std = INIT_STD

    def nrm(k, shape):
        return (jax.random.normal(k, shape, jnp.float32) * std).astype(DTYPE)

    tok_emb = nrm(keys[0], (VOCAB, HIDDEN))
    tok_emb = tok_emb.at[PAD_TOKEN].set(0.0)             # padding_idx row zeroed

    wqkv, wo, wgu, wd, attn_norm, mlp_norm = [], [], [], [], [], []
    for li in range(N_LAYERS):
        lk = jax.random.split(keys[2 + li], 7)
        # weights stored pre-transposed: (in, out); Q|K|V and gate|up fused.
        wq = nrm(lk[0], (HIDDEN, N_HEADS * HEAD_DIM))
        wk = nrm(lk[1], (HIDDEN, N_HEADS * HEAD_DIM))
        wv = nrm(lk[2], (HIDDEN, N_HEADS * HEAD_DIM))
        wqkv.append(jnp.concatenate([wq, wk, wv], axis=1))            # (D, 3D)
        wo.append(nrm(lk[3], (N_HEADS * HEAD_DIM, HIDDEN)))           # (D, D)
        wg = nrm(lk[4], (HIDDEN, INTER))
        wu = nrm(lk[5], (HIDDEN, INTER))
        wgu.append(jnp.concatenate([wg, wu], axis=1))                 # (D, 2F)
        wd.append(nrm(lk[6], (INTER, HIDDEN)))                        # (F, D)
        attn_norm.append(jnp.ones((1, HIDDEN), DTYPE))
        mlp_norm.append(jnp.ones((1, HIDDEN), DTYPE))

    return dict(
        tok_emb=tok_emb,
        attn_norm=jnp.stack(attn_norm),      # (L, 1, D)
        mlp_norm=jnp.stack(mlp_norm),        # (L, 1, D)
        wqkv=jnp.stack(wqkv),                # (L, D, 3D)
        wo=jnp.stack(wo),                    # (L, D, D)
        wgu=jnp.stack(wgu),                  # (L, D, 2F)
        wd=jnp.stack(wd),                    # (L, F, D)
        norm_w=jnp.ones((1, HIDDEN), DTYPE),
        out_w=nrm(keys[1], (HIDDEN, VOCAB)),  # untied output head (in, out)
    )


@jax.jit
def llm_forward(params, input_ids):
    B, S = input_ids.shape
    M = B * S
    # Embedding gather stays in plain JAX (no clean Pallas equivalent short of
    # a manual DMA gather; it is a single XLA op).
    x = jnp.take(params["tok_emb"], input_ids, axis=0).reshape(M, HIDDEN)

    cos, sin = rope_freqs(S, HEAD_DIM)                   # input_pos = arange(S)
    cos_m = jnp.tile(cos, (B, 1)).astype(DTYPE)          # (M, Dh)
    sin_m = jnp.tile(sin, (B, 1)).astype(DTYPE)
    bias = build_attn_bias(B, S)                         # (M, M) f32, const

    logits = pl.pallas_call(
        functools.partial(_llm_fused_kernel, RMS_EPS),
        out_shape=jax.ShapeDtypeStruct((M, VOCAB), DTYPE),
        grid_spec=pltpu.PrefetchScalarGridSpec(
            num_scalar_prefetch=0,
            grid=(N_LAYERS,),
            in_specs=[
                pl.BlockSpec((M, HIDDEN), lambda l: (0, 0)),              # x_emb
                pl.BlockSpec((M, HEAD_DIM), lambda l: (0, 0)),            # cos
                pl.BlockSpec((M, HEAD_DIM), lambda l: (0, 0)),            # sin
                pl.BlockSpec((M, M), lambda l: (0, 0)),                   # attn bias
                pl.BlockSpec((1, 1, HIDDEN), lambda l: (l, 0, 0)),        # attn_norm
                pl.BlockSpec((1, HIDDEN, 3 * HIDDEN), lambda l: (l, 0, 0)),  # wqkv
                pl.BlockSpec((1, HIDDEN, HIDDEN), lambda l: (l, 0, 0)),   # wo
                pl.BlockSpec((1, 1, HIDDEN), lambda l: (l, 0, 0)),        # mlp_norm
                pl.BlockSpec((1, HIDDEN, 2 * INTER), lambda l: (l, 0, 0)),   # wgu
                pl.BlockSpec((1, INTER, HIDDEN), lambda l: (l, 0, 0)),    # wd
                pl.BlockSpec((1, HIDDEN), lambda l: (0, 0)),              # final norm
                pl.BlockSpec((HIDDEN, VOCAB), lambda l: (0, 0)),          # out_w
            ],
            out_specs=pl.BlockSpec((M, VOCAB), lambda l: (0, 0)),
            scratch_shapes=[pltpu.VMEM((M, HIDDEN), jnp.float32)],
        ),
        compiler_params=pltpu.CompilerParams(
            dimension_semantics=("arbitrary",)),          # carried layer loop
    )(x, cos_m, sin_m, bias,
      params["attn_norm"], params["wqkv"], params["wo"],
      params["mlp_norm"], params["wgu"], params["wd"],
      params["norm_w"], params["out_w"])

    return logits.reshape(B, S, VOCAB)


if __name__ == "__main__":
    key = jax.random.PRNGKey(0)
    pkey, ikey = jax.random.split(key)
    params = init_params(pkey)
    input_ids = jax.random.randint(ikey, (BATCH, SEQ), 0, VOCAB, dtype=jnp.int32)
    logits = llm_forward(params, input_ids)
    jax.block_until_ready(logits)
    assert logits.shape == (BATCH, SEQ, VOCAB)
    assert bool(jnp.all(jnp.isfinite(logits)))
    print("KERNEL_OK")
</pallas_src>

<mosaic_0001>
module attributes {stable_mosaic.version = 11 : i64} {
  func.func @_llm_fused_kernel(%arg0: i32, %arg1: memref<16x64xf32, #tpu.memory_space<vmem>>, %arg2: memref<16x16xf32, #tpu.memory_space<vmem>>, %arg3: memref<16x16xf32, #tpu.memory_space<vmem>>, %arg4: memref<16x16xf32, #tpu.memory_space<vmem>>, %arg5: memref<1x1x64xf32, #tpu.memory_space<vmem>>, %arg6: memref<1x64x192xf32, #tpu.memory_space<vmem>>, %arg7: memref<1x64x64xf32, #tpu.memory_space<vmem>>, %arg8: memref<1x1x64xf32, #tpu.memory_space<vmem>>, %arg9: memref<1x64x256xf32, #tpu.memory_space<vmem>>, %arg10: memref<1x128x64xf32, #tpu.memory_space<vmem>>, %arg11: memref<1x64xf32, #tpu.memory_space<vmem>>, %arg12: memref<64x256xf32, #tpu.memory_space<vmem>>, %arg13: memref<16x256xf32, #tpu.memory_space<vmem>>, %arg14: memref<16x64xf32, #tpu.memory_space<vmem>>) attributes {dimension_semantics = [#tpu.dimension_semantics<arbitrary>], iteration_bounds = array<i64: 2>, scalar_prefetch = 0 : i64, scratch_operands = 1 : i64, tpu.core_type = #tpu.core_type<tc>, window_params = [{pipeline_mode = #tpu.pipeline_mode<synchronous>, transform_indices = @transform_0, window_bounds = array<i64: 16, 64>}, {pipeline_mode = #tpu.pipeline_mode<synchronous>, transform_indices = @transform_1, window_bounds = array<i64: 16, 16>}, {pipeline_mode = #tpu.pipeline_mode<synchronous>, transform_indices = @transform_2, window_bounds = array<i64: 16, 16>}, {pipeline_mode = #tpu.pipeline_mode<synchronous>, transform_indices = @transform_3, window_bounds = array<i64: 16, 16>}, {transform_indices = @transform_4, window_bounds = array<i64: 1, 1, 64>}, {transform_indices = @transform_5, window_bounds = array<i64: 1, 64, 192>}, {transform_indices = @transform_6, window_bounds = array<i64: 1, 64, 64>}, {transform_indices = @transform_7, window_bounds = array<i64: 1, 1, 64>}, {transform_indices = @transform_8, window_bounds = array<i64: 1, 64, 256>}, {transform_indices = @transform_9, window_bounds = array<i64: 1, 128, 64>}, {pipeline_mode = #tpu.pipeline_mode<synchronous>, transform_indices = @transform_10, window_bounds = array<i64: 1, 64>}, {pipeline_mode = #tpu.pipeline_mode<synchronous>, transform_indices = @transform_11, window_bounds = array<i64: 64, 256>}, {pipeline_mode = #tpu.pipeline_mode<synchronous>, transform_indices = @transform_12, window_bounds = array<i64: 16, 256>}]} {
    %c0_i32 = arith.constant 0 : i32
    %0 = arith.cmpi eq, %arg0, %c0_i32 : i32
    %1 = arith.extui %0 : i1 to i32
    %c0_i32_0 = arith.constant 0 : i32
    %2 = arith.cmpi ne, %1, %c0_i32_0 : i32
    scf.if %2 {
      %c0_67 = arith.constant 0 : index
      %c0_68 = arith.constant 0 : index
      %199 = vector.load %arg1[%c0_67, %c0_68] : memref<16x64xf32, #tpu.memory_space<vmem>>, vector<16x64xf32>
      %c0_69 = arith.constant 0 : index
      %c0_70 = arith.constant 0 : index
      %200 = vector.load %arg14[%c0_69, %c0_70] : memref<16x64xf32, #tpu.memory_space<vmem>>, vector<16x64xf32>
      tpu.vector_store %arg14[%c0_69, %c0_70], %199 {strides = array<i32>} : memref<16x64xf32, #tpu.memory_space<vmem>>, vector<16x64xf32>,
    } else {
    }
    %c0 = arith.constant 0 : index
    %c0_1 = arith.constant 0 : index
    %3 = vector.load %arg14[%c0, %c0_1] : memref<16x64xf32, #tpu.memory_space<vmem>>, vector<16x64xf32>
    %c0_2 = arith.constant 0 : index
    %c0_3 = arith.constant 0 : index
    %4 = vector.load %arg2[%c0_2, %c0_3] : memref<16x16xf32, #tpu.memory_space<vmem>>, vector<16x16xf32>
    %c0_4 = arith.constant 0 : index
    %c0_5 = arith.constant 0 : index
    %5 = vector.load %arg3[%c0_4, %c0_5] : memref<16x16xf32, #tpu.memory_space<vmem>>, vector<16x16xf32>
    %c0_6 = arith.constant 0 : index
    %c0_7 = arith.constant 0 : index
    %6 = vector.load %arg4[%c0_6, %c0_7] : memref<16x16xf32, #tpu.memory_space<vmem>>, vector<16x16xf32>
    %c0_8 = arith.constant 0 : index
    %c0_9 = arith.constant 0 : index
    %c0_10 = arith.constant 0 : index
    %7 = vector.load %arg5[%c0_8, %c0_9, %c0_10] : memref<1x1x64xf32, #tpu.memory_space<vmem>>, vector<1x1x64xf32>
    %8 = vector.shape_cast %7 : vector<1x1x64xf32> to vector<1x64xf32>
    %9 = arith.mulf %3, %3 : vector<16x64xf32>
    %cst = arith.constant dense<0.000000e+00> : vector<16xf32>
    %10 = vector.multi_reduction <add>, %9, %cst [1] : vector<16x64xf32> to vector<16xf32>
    %11 = vector.shape_cast %10 : vector<16xf32> to vector<16x1xf32>
    %cst_11 = arith.constant 6.400000e+01 : f32
    %12 = vector.broadcast %cst_11 : f32 to vector<16x1xf32>
    %13 = arith.divf %11, %12 : vector<16x1xf32>
    %cst_12 = arith.constant 9.99999974E-6 : f32
    %14 = vector.broadcast %cst_12 : f32 to vector<16x1xf32>
    %15 = arith.addf %13, %14 : vector<16x1xf32>
    %16 = math.rsqrt %15 : vector<16x1xf32>
    %17 = vector.broadcast %16 : vector<16x1xf32> to vector<16x64xf32>
    %18 = arith.mulf %3, %17 : vector<16x64xf32>
    %19 = vector.broadcast %8 : vector<1x64xf32> to vector<16x64xf32>
    %20 = arith.mulf %18, %19 : vector<16x64xf32>
    %c0_13 = arith.constant 0 : index
    %c0_14 = arith.constant 0 : index
    %c0_15 = arith.constant 0 : index
    %21 = vector.load %arg6[%c0_13, %c0_14, %c0_15] : memref<1x64x192xf32, #tpu.memory_space<vmem>>, vector<1x64x192xf32>
    %22 = vector.shape_cast %21 : vector<1x64x192xf32> to vector<64x192xf32>
    %cst_16 = arith.constant dense<0.000000e+00> : vector<16x192xf32>
    %23 = tpu.matmul %20, %22, %cst_16 {dimension_numbers = #tpu.dot_dimension_numbers<[1], [0], [0], [1], [0, 0, 1, 1], [], []>} : vector<16x64xf32>, vector<64x192xf32>, vector<16x192xf32> -> vector<16x192xf32>
    %24 = vector.extract_strided_slice %23 {offsets = [0, 0], sizes = [16, 16], strides = [1, 1]} : vector<16x192xf32> to vector<16x16xf32>
    %25 = vector.extract_strided_slice %23 {offsets = [0, 64], sizes = [16, 16], strides = [1, 1]} : vector<16x192xf32> to vector<16x16xf32>
    %26 = vector.extract_strided_slice %23 {offsets = [0, 128], sizes = [16, 16], strides = [1, 1]} : vector<16x192xf32> to vector<16x16xf32>
    %27 = arith.mulf %24, %4 : vector<16x16xf32>
    %28 = vector.extract_strided_slice %24 {offsets = [0, 8], sizes = [16, 8], strides = [1, 1]} : vector<16x16xf32> to vector<16x8xf32>
    %cst_17 = arith.constant 0.000000e+00 : f32
    %29 = vector.broadcast %cst_17 : f32 to vector<16x8xf32>
    %30 = arith.subf %29, %28 : vector<16x8xf32>
    %31 = vector.extract_strided_slice %24 {offsets = [0, 0], sizes = [16, 8], strides = [1, 1]} : vector<16x16xf32> to vector<16x8xf32>
    %32 = tpu.concatenate %30, %31 in 1 : vector<16x8xf32>, vector<16x8xf32> -> vector<16x16xf32>
    %33 = arith.mulf %32, %5 : vector<16x16xf32>
    %34 = arith.addf %27, %33 : vector<16x16xf32>
    %35 = arith.mulf %25, %4 : vector<16x16xf32>
    %36 = vector.extract_strided_slice %25 {offsets = [0, 8], sizes = [16, 8], strides = [1, 1]} : vector<16x16xf32> to vector<16x8xf32>
    %cst_18 = arith.constant 0.000000e+00 : f32
    %37 = vector.broadcast %cst_18 : f32 to vector<16x8xf32>
    %38 = arith.subf %37, %36 : vector<16x8xf32>
    %39 = vector.extract_strided_slice %25 {offsets = [0, 0], sizes = [16, 8], strides = [1, 1]} : vector<16x16xf32> to vector<16x8xf32>
    %40 = tpu.concatenate %38, %39 in 1 : vector<16x8xf32>, vector<16x8xf32> -> vector<16x16xf32>
    %41 = arith.mulf %40, %5 : vector<16x16xf32>
    %42 = arith.addf %35, %41 : vector<16x16xf32>
    %cst_19 = arith.constant dense<0.000000e+00> : vector<16x16xf32>
    %43 = tpu.matmul %34, %42, %cst_19 {dimension_numbers = #tpu.dot_dimension_numbers<[1], [1], [0], [0], [0, 0, 1, 0], [], []>} : vector<16x16xf32>, vector<16x16xf32>, vector<16x16xf32> -> vector<16x16xf32>
    %cst_20 = arith.constant 2.500000e-01 : f32
    %44 = vector.broadcast %cst_20 : f32 to vector<16x16xf32>
    %45 = arith.mulf %43, %44 : vector<16x16xf32>
    %46 = arith.addf %45, %6 : vector<16x16xf32>
    %cst_21 = arith.constant dense<0xFF800000> : vector<16xf32>
    %47 = vector.multi_reduction <maximumf>, %46, %cst_21 [1] : vector<16x16xf32> to vector<16xf32>
    %48 = vector.shape_cast %47 : vector<16xf32> to vector<16x1xf32>
    %49 = vector.broadcast %48 : vector<16x1xf32> to vector<16x16xf32>
    %50 = arith.subf %46, %49 : vector<16x16xf32>
    %51 = math.exp %50 : vector<16x16xf32>
    %cst_22 = arith.constant dense<0.000000e+00> : vector<16xf32>
    %52 = vector.multi_reduction <add>, %51, %cst_22 [1] : vector<16x16xf32> to vector<16xf32>
    %53 = vector.shape_cast %52 : vector<16xf32> to vector<16x1xf32>
    %54 = tpu.reciprocal %53 {approx = true} : vector<16x1xf32> -> vector<16x1xf32>
    %55 = vector.broadcast %54 : vector<16x1xf32> to vector<16x16xf32>
    %56 = arith.mulf %51, %55 : vector<16x16xf32>
    %cst_23 = arith.constant dense<0.000000e+00> : vector<16x16xf32>
    %57 = tpu.matmul %56, %26, %cst_23 {dimension_numbers = #tpu.dot_dimension_numbers<[1], [0], [0], [1], [0, 0, 1, 1], [], []>} : vector<16x16xf32>, vector<16x16xf32>, vector<16x16xf32> -> vector<16x16xf32>
    %58 = vector.extract_strided_slice %23 {offsets = [0, 16], sizes = [16, 16], strides = [1, 1]} : vector<16x192xf32> to vector<16x16xf32>
    %59 = vector.extract_strided_slice %23 {offsets = [0, 80], sizes = [16, 16], strides = [1, 1]} : vector<16x192xf32> to vector<16x16xf32>
    %60 = vector.extract_strided_slice %23 {offsets = [0, 144], sizes = [16, 16], strides = [1, 1]} : vector<16x192xf32> to vector<16x16xf32>
    %61 = arith.mulf %58, %4 : vector<16x16xf32>
    %62 = vector.extract_strided_slice %58 {offsets = [0, 8], sizes = [16, 8], strides = [1, 1]} : vector<16x16xf32> to vector<16x8xf32>
    %cst_24 = arith.constant 0.000000e+00 : f32
    %63 = vector.broadcast %cst_24 : f32 to vector<16x8xf32>
    %64 = arith.subf %63, %62 : vector<16x8xf32>
    %65 = vector.extract_strided_slice %58 {offsets = [0, 0], sizes = [16, 8], strides = [1, 1]} : vector<16x16xf32> to vector<16x8xf32>
    %66 = tpu.concatenate %64, %65 in 1 : vector<16x8xf32>, vector<16x8xf32> -> vector<16x16xf32>
    %67 = arith.mulf %66, %5 : vector<16x16xf32>
    %68 = arith.addf %61, %67 : vector<16x16xf32>
    %69 = arith.mulf %59, %4 : vector<16x16xf32>
    %70 = vector.extract_strided_slice %59 {offsets = [0, 8], sizes = [16, 8], strides = [1, 1]} : vector<16x16xf32> to vector<16x8xf32>
    %cst_25 = arith.constant 0.000000e+00 : f32
    %71 = vector.broadcast %cst_25 : f32 to vector<16x8xf32>
    %72 = arith.subf %71, %70 : vector<16x8xf32>
    %73 = vector.extract_strided_slice %59 {offsets = [0, 0], sizes = [16, 8], strides = [1, 1]} : vector<16x16xf32> to vector<16x8xf32>
    %74 = tpu.concatenate %72, %73 in 1 : vector<16x8xf32>, vector<16x8xf32> -> vector<16x16xf32>
    %75 = arith.mulf %74, %5 : vector<16x16xf32>
    %76 = arith.addf %69, %75 : vector<16x16xf32>
    %cst_26 = arith.constant dense<0.000000e+00> : vector<16x16xf32>
    %77 = tpu.matmul %68, %76, %cst_26 {dimension_numbers = #tpu.dot_dimension_numbers<[1], [1], [0], [0], [0, 0, 1, 0], [], []>} : vector<16x16xf32>, vector<16x16xf32>, vector<16x16xf32> -> vector<16x16xf32>
    %cst_27 = arith.constant 2.500000e-01 : f32
    %78 = vector.broadcast %cst_27 : f32 to vector<16x16xf32>
    %79 = arith.mulf %77, %78 : vector<16x16xf32>
    %80 = arith.addf %79, %6 : vector<16x16xf32>
    %cst_28 = arith.constant dense<0xFF800000> : vector<16xf32>
    %81 = vector.multi_reduction <maximumf>, %80, %cst_28 [1] : vector<16x16xf32> to vector<16xf32>
    %82 = vector.shape_cast %81 : vector<16xf32> to vector<16x1xf32>
    %83 = vector.broadcast %82 : vector<16x1xf32> to vector<16x16xf32>
    %84 = arith.subf %80, %83 : vector<16x16xf32>
    %85 = math.exp %84 : vector<16x16xf32>
    %cst_29 = arith.constant dense<0.000000e+00> : vector<16xf32>
    %86 = vector.multi_reduction <add>, %85, %cst_29 [1] : vector<16x16xf32> to vector<16xf32>
    %87 = vector.shape_cast %86 : vector<16xf32> to vector<16x1xf32>
    %88 = tpu.reciprocal %87 {approx = true} : vector<16x1xf32> -> vector<16x1xf32>
    %89 = vector.broadcast %88 : vector<16x1xf32> to vector<16x16xf32>
    %90 = arith.mulf %85, %89 : vector<16x16xf32>
    %cst_30 = arith.constant dense<0.000000e+00> : vector<16x16xf32>
    %91 = tpu.matmul %90, %60, %cst_30 {dimension_numbers = #tpu.dot_dimension_numbers<[1], [0], [0], [1], [0, 0, 1, 1], [], []>} : vector<16x16xf32>, vector<16x16xf32>, vector<16x16xf32> -> vector<16x16xf32>
    %92 = vector.extract_strided_slice %23 {offsets = [0, 32], sizes = [16, 16], strides = [1, 1]} : vector<16x192xf32> to vector<16x16xf32>
    %93 = vector.extract_strided_slice %23 {offsets = [0, 96], sizes = [16, 16], strides = [1, 1]} : vector<16x192xf32> to vector<16x16xf32>
    %94 = vector.extract_strided_slice %23 {offsets = [0, 160], sizes = [16, 16], strides = [1, 1]} : vector<16x192xf32> to vector<16x16xf32>
    %95 = arith.mulf %92, %4 : vector<16x16xf32>
    %96 = vector.extract_strided_slice %92 {offsets = [0, 8], sizes = [16, 8], strides = [1, 1]} : vector<16x16xf32> to vector<16x8xf32>
    %cst_31 = arith.constant 0.000000e+00 : f32
    %97 = vector.broadcast %cst_31 : f32 to vector<16x8xf32>
    %98 = arith.subf %97, %96 : vector<16x8xf32>
    %99 = vector.extract_strided_slice %92 {offsets = [0, 0], sizes = [16, 8], strides = [1, 1]} : vector<16x16xf32> to vector<16x8xf32>
    %100 = tpu.concatenate %98, %99 in 1 : vector<16x8xf32>, vector<16x8xf32> -> vector<16x16xf32>
    %101 = arith.mulf %100, %5 : vector<16x16xf32>
    %102 = arith.addf %95, %101 : vector<16x16xf32>
    %103 = arith.mulf %93, %4 : vector<16x16xf32>
    %104 = vector.extract_strided_slice %93 {offsets = [0, 8], sizes = [16, 8], strides = [1, 1]} : vector<16x16xf32> to vector<16x8xf32>
    %cst_32 = arith.constant 0.000000e+00 : f32
    %105 = vector.broadcast %cst_32 : f32 to vector<16x8xf32>
    %106 = arith.subf %105, %104 : vector<16x8xf32>
    %107 = vector.extract_strided_slice %93 {offsets = [0, 0], sizes = [16, 8], strides = [1, 1]} : vector<16x16xf32> to vector<16x8xf32>
    %108 = tpu.concatenate %106, %107 in 1 : vector<16x8xf32>, vector<16x8xf32> -> vector<16x16xf32>
    %109 = arith.mulf %108, %5 : vector<16x16xf32>
    %110 = arith.addf %103, %109 : vector<16x16xf32>
    %cst_33 = arith.constant dense<0.000000e+00> : vector<16x16xf32>
    %111 = tpu.matmul %102, %110, %cst_33 {dimension_numbers = #tpu.dot_dimension_numbers<[1], [1], [0], [0], [0, 0, 1, 0], [], []>} : vector<16x16xf32>, vector<16x16xf32>, vector<16x16xf32> -> vector<16x16xf32>
    %cst_34 = arith.constant 2.500000e-01 : f32
    %112 = vector.broadcast %cst_34 : f32 to vector<16x16xf32>
    %113 = arith.mulf %111, %112 : vector<16x16xf32>
    %114 = arith.addf %113, %6 : vector<16x16xf32>
    %cst_35 = arith.constant dense<0xFF800000> : vector<16xf32>
    %115 = vector.multi_reduction <maximumf>, %114, %cst_35 [1] : vector<16x16xf32> to vector<16xf32>
    %116 = vector.shape_cast %115 : vector<16xf32> to vector<16x1xf32>
    %117 = vector.broadcast %116 : vector<16x1xf32> to vector<16x16xf32>
    %118 = arith.subf %114, %117 : vector<16x16xf32>
    %119 = math.exp %118 : vector<16x16xf32>
    %cst_36 = arith.constant dense<0.000000e+00> : vector<16xf32>
    %120 = vector.multi_reduction <add>, %119, %cst_36 [1] : vector<16x16xf32> to vector<16xf32>
    %121 = vector.shape_cast %120 : vector<16xf32> to vector<16x1xf32>
    %122 = tpu.reciprocal %121 {approx = true} : vector<16x1xf32> -> vector<16x1xf32>
    %123 = vector.broadcast %122 : vector<16x1xf32> to vector<16x16xf32>
    %124 = arith.mulf %119, %123 : vector<16x16xf32>
    %cst_37 = arith.constant dense<0.000000e+00> : vector<16x16xf32>
    %125 = tpu.matmul %124, %94, %cst_37 {dimension_numbers = #tpu.dot_dimension_numbers<[1], [0], [0], [1], [0, 0, 1, 1], [], []>} : vector<16x16xf32>, vector<16x16xf32>, vector<16x16xf32> -> vector<16x16xf32>
    %126 = vector.extract_strided_slice %23 {offsets = [0, 48], sizes = [16, 16], strides = [1, 1]} : vector<16x192xf32> to vector<16x16xf32>
    %127 = vector.extract_strided_slice %23 {offsets = [0, 112], sizes = [16, 16], strides = [1, 1]} : vector<16x192xf32> to vector<16x16xf32>
    %128 = vector.extract_strided_slice %23 {offsets = [0, 176], sizes = [16, 16], strides = [1, 1]} : vector<16x192xf32> to vector<16x16xf32>
    %129 = arith.mulf %126, %4 : vector<16x16xf32>
    %130 = vector.extract_strided_slice %126 {offsets = [0, 8], sizes = [16, 8], strides = [1, 1]} : vector<16x16xf32> to vector<16x8xf32>
    %cst_38 = arith.constant 0.000000e+00 : f32
    %131 = vector.broadcast %cst_38 : f32 to vector<16x8xf32>
    %132 = arith.subf %131, %130 : vector<16x8xf32>
    %133 = vector.extract_strided_slice %126 {offsets = [0, 0], sizes = [16, 8], strides = [1, 1]} : vector<16x16xf32> to vector<16x8xf32>
    %134 = tpu.concatenate %132, %133 in 1 : vector<16x8xf32>, vector<16x8xf32> -> vector<16x16xf32>
    %135 = arith.mulf %134, %5 : vector<16x16xf32>
    %136 = arith.addf %129, %135 : vector<16x16xf32>
    %137 = arith.mulf %127, %4 : vector<16x16xf32>
    %138 = vector.extract_strided_slice %127 {offsets = [0, 8], sizes = [16, 8], strides = [1, 1]} : vector<16x16xf32> to vector<16x8xf32>
    %cst_39 = arith.constant 0.000000e+00 : f32
    %139 = vector.broadcast %cst_39 : f32 to vector<16x8xf32>
    %140 = arith.subf %139, %138 : vector<16x8xf32>
    %141 = vector.extract_strided_slice %127 {offsets = [0, 0], sizes = [16, 8], strides = [1, 1]} : vector<16x16xf32> to vector<16x8xf32>
    %142 = tpu.concatenate %140, %141 in 1 : vector<16x8xf32>, vector<16x8xf32> -> vector<16x16xf32>
    %143 = arith.mulf %142, %5 : vector<16x16xf32>
    %144 = arith.addf %137, %143 : vector<16x16xf32>
    %cst_40 = arith.constant dense<0.000000e+00> : vector<16x16xf32>
    %145 = tpu.matmul %136, %144, %cst_40 {dimension_numbers = #tpu.dot_dimension_numbers<[1], [1], [0], [0], [0, 0, 1, 0], [], []>} : vector<16x16xf32>, vector<16x16xf32>, vector<16x16xf32> -> vector<16x16xf32>
    %cst_41 = arith.constant 2.500000e-01 : f32
    %146 = vector.broadcast %cst_41 : f32 to vector<16x16xf32>
    %147 = arith.mulf %145, %146 : vector<16x16xf32>
    %148 = arith.addf %147, %6 : vector<16x16xf32>
    %cst_42 = arith.constant dense<0xFF800000> : vector<16xf32>
    %149 = vector.multi_reduction <maximumf>, %148, %cst_42 [1] : vector<16x16xf32> to vector<16xf32>
    %150 = vector.shape_cast %149 : vector<16xf32> to vector<16x1xf32>
    %151 = vector.broadcast %150 : vector<16x1xf32> to vector<16x16xf32>
    %152 = arith.subf %148, %151 : vector<16x16xf32>
    %153 = math.exp %152 : vector<16x16xf32>
    %cst_43 = arith.constant dense<0.000000e+00> : vector<16xf32>
    %154 = vector.multi_reduction <add>, %153, %cst_43 [1] : vector<16x16xf32> to vector<16xf32>
    %155 = vector.shape_cast %154 : vector<16xf32> to vector<16x1xf32>
    %156 = tpu.reciprocal %155 {approx = true} : vector<16x1xf32> -> vector<16x1xf32>
    %157 = vector.broadcast %156 : vector<16x1xf32> to vector<16x16xf32>
    %158 = arith.mulf %153, %157 : vector<16x16xf32>
    %cst_44 = arith.constant dense<0.000000e+00> : vector<16x16xf32>
    %159 = tpu.matmul %158, %128, %cst_44 {dimension_numbers = #tpu.dot_dimension_numbers<[1], [0], [0], [1], [0, 0, 1, 1], [], []>} : vector<16x16xf32>, vector<16x16xf32>, vector<16x16xf32> -> vector<16x16xf32>
    %160 = tpu.concatenate %57, %91, %125, %159 in 1 : vector<16x16xf32>, vector<16x16xf32>, vector<16x16xf32>, vector<16x16xf32> -> vector<16x64xf32>
    %c0_45 = arith.constant 0 : index
    %c0_46 = arith.constant 0 : index
    %c0_47 = arith.constant 0 : index
    %161 = vector.load %arg7[%c0_45, %c0_46, %c0_47] : memref<1x64x64xf32, #tpu.memory_space<vmem>>, vector<1x64x64xf32>
    %162 = vector.shape_cast %161 : vector<1x64x64xf32> to vector<64x64xf32>
    %cst_48 = arith.constant dense<0.000000e+00> : vector<16x64xf32>
    %163 = tpu.matmul %160, %162, %cst_48 {dimension_numbers = #tpu.dot_dimension_numbers<[1], [0], [0], [1], [0, 0, 1, 1], [], []>} : vector<16x64xf32>, vector<64x64xf32>, vector<16x64xf32> -> vector<16x64xf32>
    %164 = arith.addf %3, %163 : vector<16x64xf32>
    %c0_49 = arith.constant 0 : index
    %c0_50 = arith.constant 0 : index
    %c0_51 = arith.constant 0 : index
    %165 = vector.load %arg8[%c0_49, %c0_50, %c0_51] : memref<1x1x64xf32, #tpu.memory_space<vmem>>, vector<1x1x64xf32>
    %166 = vector.shape_cast %165 : vector<1x1x64xf32> to vector<1x64xf32>
    %167 = arith.mulf %164, %164 : vector<16x64xf32>
    %cst_52 = arith.constant dense<0.000000e+00> : vector<16xf32>
    %168 = vector.multi_reduction <add>, %167, %cst_52 [1] : vector<16x64xf32> to vector<16xf32>
    %169 = vector.shape_cast %168 : vector<16xf32> to vector<16x1xf32>
    %cst_53 = arith.constant 6.400000e+01 : f32
    %170 = vector.broadcast %cst_53 : f32 to vector<16x1xf32>
    %171 = arith.divf %169, %170 : vector<16x1xf32>
    %cst_54 = arith.constant 9.99999974E-6 : f32
    %172 = vector.broadcast %cst_54 : f32 to vector<16x1xf32>
    %173 = arith.addf %171, %172 : vector<16x1xf32>
    %174 = math.rsqrt %173 : vector<16x1xf32>
    %175 = vector.broadcast %174 : vector<16x1xf32> to vector<16x64xf32>
    %176 = arith.mulf %164, %175 : vector<16x64xf32>
    %177 = vector.broadcast %166 : vector<1x64xf32> to vector<16x64xf32>
    %178 = arith.mulf %176, %177 : vector<16x64xf32>
    %c0_55 = arith.constant 0 : index
    %c0_56 = arith.constant 0 : index
    %c0_57 = arith.constant 0 : index
    %179 = vector.load %arg9[%c0_55, %c0_56, %c0_57] : memref<1x64x256xf32, #tpu.memory_space<vmem>>, vector<1x64x256xf32>
    %180 = vector.shape_cast %179 : vector<1x64x256xf32> to vector<64x256xf32>
    %cst_58 = arith.constant dense<0.000000e+00> : vector<16x256xf32>
    %181 = tpu.matmul %178, %180, %cst_58 {dimension_numbers = #tpu.dot_dimension_numbers<[1], [0], [0], [1], [0, 0, 1, 1], [], []>} : vector<16x64xf32>, vector<64x256xf32>, vector<16x256xf32> -> vector<16x256xf32>
    %182 = vector.extract_strided_slice %181 {offsets = [0, 0], sizes = [16, 128], strides = [1, 1]} : vector<16x256xf32> to vector<16x128xf32>
    %183 = vector.extract_strided_slice %181 {offsets = [0, 128], sizes = [16, 128], strides = [1, 1]} : vector<16x256xf32> to vector<16x128xf32>
    %184 = arith.negf %182 : vector<16x128xf32>
    %185 = math.exp %184 : vector<16x128xf32>
    %cst_59 = arith.constant 1.000000e+00 : f32
    %186 = vector.broadcast %cst_59 : f32 to vector<16x128xf32>
    %187 = arith.addf %186, %185 : vector<16x128xf32>
    %188 = arith.divf %186, %187 : vector<16x128xf32>
    %189 = arith.mulf %182, %188 : vector<16x128xf32>
    %190 = arith.mulf %189, %183 : vector<16x128xf32>
    %c0_60 = arith.constant 0 : index
    %c0_61 = arith.constant 0 : index
    %c0_62 = arith.constant 0 : index
    %191 = vector.load %arg10[%c0_60, %c0_61, %c0_62] : memref<1x128x64xf32, #tpu.memory_space<vmem>>, vector<1x128x64xf32>
    %192 = vector.shape_cast %191 : vector<1x128x64xf32> to vector<128x64xf32>
    %cst_63 = arith.constant dense<0.000000e+00> : vector<16x64xf32>
    %193 = tpu.matmul %190, %192, %cst_63 {dimension_numbers = #tpu.dot_dimension_numbers<[1], [0], [0], [1], [0, 0, 1, 1], [], []>} : vector<16x128xf32>, vector<128x64xf32>, vector<16x64xf32> -> vector<16x64xf32>
    %194 = arith.addf %164, %193 : vector<16x64xf32>
    %c0_64 = arith.constant 0 : index
    %c0_65 = arith.constant 0 : index
    %195 = vector.load %arg14[%c0_64, %c0_65] : memref<16x64xf32, #tpu.memory_space<vmem>>, vector<16x64xf32>
    tpu.vector_store %arg14[%c0_64, %c0_65], %194 {strides = array<i32>} : memref<16x64xf32, #tpu.memory_space<vmem>>, vector<16x64xf32>,
    %c1_i32 = arith.constant 1 : i32
    %196 = arith.cmpi eq, %arg0, %c1_i32 : i32
    %197 = arith.extui %196 : i1 to i32
    %c0_i32_66 = arith.constant 0 : i32
    %198 = arith.cmpi ne, %197, %c0_i32_66 : i32
    scf.if %198 {
      %c0_67 = arith.constant 0 : index
      %c0_68 = arith.constant 0 : index
      %199 = vector.load %arg11[%c0_67, %c0_68] : memref<1x64xf32, #tpu.memory_space<vmem>>, vector<1x64xf32>
      %200 = arith.mulf %194, %194 : vector<16x64xf32>
      %cst_69 = arith.constant dense<0.000000e+00> : vector<16xf32>
      %201 = vector.multi_reduction <add>, %200, %cst_69 [1] : vector<16x64xf32> to vector<16xf32>
      %202 = vector.shape_cast %201 : vector<16xf32> to vector<16x1xf32>
      %cst_70 = arith.constant 6.400000e+01 : f32
      %203 = vector.broadcast %cst_70 : f32 to vector<16x1xf32>
      %204 = arith.divf %202, %203 : vector<16x1xf32>
      %cst_71 = arith.constant 9.99999974E-6 : f32
      %205 = vector.broadcast %cst_71 : f32 to vector<16x1xf32>
      %206 = arith.addf %204, %205 : vector<16x1xf32>
      %207 = math.rsqrt %206 : vector<16x1xf32>
      %208 = vector.broadcast %207 : vector<16x1xf32> to vector<16x64xf32>
      %209 = arith.mulf %194, %208 : vector<16x64xf32>
      %210 = vector.broadcast %199 : vector<1x64xf32> to vector<16x64xf32>
      %211 = arith.mulf %209, %210 : vector<16x64xf32>
      %c0_72 = arith.constant 0 : index
      %c0_73 = arith.constant 0 : index
      %212 = vector.load %arg12[%c0_72, %c0_73] : memref<64x256xf32, #tpu.memory_space<vmem>>, vector<64x256xf32>
      %cst_74 = arith.constant dense<0.000000e+00> : vector<16x256xf32>
      %213 = tpu.matmul %211, %212, %cst_74 {dimension_numbers = #tpu.dot_dimension_numbers<[1], [0], [0], [1], [0, 0, 1, 1], [], []>} : vector<16x64xf32>, vector<64x256xf32>, vector<16x256xf32> -> vector<16x256xf32>
      %c0_75 = arith.constant 0 : index
      %c0_76 = arith.constant 0 : index
      %214 = vector.load %arg13[%c0_75, %c0_76] : memref<16x256xf32, #tpu.memory_space<vmem>>, vector<16x256xf32>
      tpu.vector_store %arg13[%c0_75, %c0_76], %213 {strides = array<i32>} : memref<16x256xf32, #tpu.memory_space<vmem>>, vector<16x256xf32>,
    } else {
    }
    return
  }
  func.func @transform_0(%arg0: i32) -> (i32, i32) {
    %c0_i32 = arith.constant 0 : i32
    %c0_i32_0 = arith.constant 0 : i32
    %c0_i32_1 = arith.constant 0 : i32
    return %c0_i32, %c0_i32_0 : i32, i32
  }
  func.func @transform_1(%arg0: i32) -> (i32, i32) {
    %c0_i32 = arith.constant 0 : i32
    %c0_i32_0 = arith.constant 0 : i32
    %c0_i32_1 = arith.constant 0 : i32
    return %c0_i32, %c0_i32_0 : i32, i32
  }
  func.func @transform_2(%arg0: i32) -> (i32, i32) {
    %c0_i32 = arith.constant 0 : i32
    %c0_i32_0 = arith.constant 0 : i32
    %c0_i32_1 = arith.constant 0 : i32
    return %c0_i32, %c0_i32_0 : i32, i32
  }
  func.func @transform_3(%arg0: i32) -> (i32, i32) {
    %c0_i32 = arith.constant 0 : i32
    %c0_i32_0 = arith.constant 0 : i32
    %c0_i32_1 = arith.constant 0 : i32
    return %c0_i32, %c0_i32_0 : i32, i32
  }
  func.func @transform_4(%arg0: i32) -> (i32, i32, i32) {
    %c0_i32 = arith.constant 0 : i32
    %c0_i32_0 = arith.constant 0 : i32
    %c0_i32_1 = arith.constant 0 : i32
    return %arg0, %c0_i32, %c0_i32_0 : i32, i32, i32
  }
  func.func @transform_5(%arg0: i32) -> (i32, i32, i32) {
    %c0_i32 = arith.constant 0 : i32
    %c0_i32_0 = arith.constant 0 : i32
    %c0_i32_1 = arith.constant 0 : i32
    return %arg0, %c0_i32, %c0_i32_0 : i32, i32, i32
  }
  func.func @transform_6(%arg0: i32) -> (i32, i32, i32) {
    %c0_i32 = arith.constant 0 : i32
    %c0_i32_0 = arith.constant 0 : i32
    %c0_i32_1 = arith.constant 0 : i32
    return %arg0, %c0_i32, %c0_i32_0 : i32, i32, i32
  }
  func.func @transform_7(%arg0: i32) -> (i32, i32, i32) {
    %c0_i32 = arith.constant 0 : i32
    %c0_i32_0 = arith.constant 0 : i32
    %c0_i32_1 = arith.constant 0 : i32
    return %arg0, %c0_i32, %c0_i32_0 : i32, i32, i32
  }
  func.func @transform_8(%arg0: i32) -> (i32, i32, i32) {
    %c0_i32 = arith.constant 0 : i32
    %c0_i32_0 = arith.constant 0 : i32
    %c0_i32_1 = arith.constant 0 : i32
    return %arg0, %c0_i32, %c0_i32_0 : i32, i32, i32
  }
  func.func @transform_9(%arg0: i32) -> (i32, i32, i32) {
    %c0_i32 = arith.constant 0 : i32
    %c0_i32_0 = arith.constant 0 : i32
    %c0_i32_1 = arith.constant 0 : i32
    return %arg0, %c0_i32, %c0_i32_0 : i32, i32, i32
  }
  func.func @transform_10(%arg0: i32) -> (i32, i32) {
    %c0_i32 = arith.constant 0 : i32
    %c0_i32_0 = arith.constant 0 : i32
    %c0_i32_1 = arith.constant 0 : i32
    return %c0_i32, %c0_i32_0 : i32, i32
  }
  func.func @transform_11(%arg0: i32) -> (i32, i32) {
    %c0_i32 = arith.constant 0 : i32
    %c0_i32_0 = arith.constant 0 : i32
    %c0_i32_1 = arith.constant 0 : i32
    return %c0_i32, %c0_i32_0 : i32, i32
  }
  func.func @transform_12(%arg0: i32) -> (i32, i32) {
    %c0_i32 = arith.constant 0 : i32
    %c0_i32_0 = arith.constant 0 : i32
    %c0_i32_1 = arith.constant 0 : i32
    return %c0_i32, %c0_i32_0 : i32, i32
  }
}

</mosaic_0001>

<bundles_post_ra>
// kernel: llm_forward.1
= control target key start
LH: loop header
LB: loop body
LE: loop exit
PB: predicated region body
PF: predicated region fallthrough
CT: control target
= control target key end

     0   :  { %17 = vsyncpa [#allocation4], 0  ;;  %s2932_s21 = smov 0   ;;  %s3470_s0 = inlined_call_operand.vmem [shape: f32[16,64], index: 0, kind: input, shape index: {}]   ;;  %s3471_s1 = inlined_call_operand.vmem [shape: f32[16,16], index: 1, kind: input, shape index: {}]   ;;  %s3472_s2 = inlined_call_operand.vmem [shape: f32[16,16], index: 2, kind: input, shape index: {}]   ;;  %s3473_s3 = inlined_call_operand.vmem [shape: f32[16,16], index: 3, kind: input, shape index: {}]   ;;  %s3474_s4 = inlined_call_operand.vmem [shape: f32[2,1,64], index: 4, kind: input, shape index: {}]   ;;  %s3475_s5 = inlined_call_operand.vmem [shape: f32[2,64,192], index: 5, kind: input, shape index: {}]   ;;  %s3476_s6 = inlined_call_operand.vmem [shape: f32[2,64,64], index: 6, kind: input, shape index: {}]   ;;  %s3477_s7 = inlined_call_operand.vmem [shape: f32[2,1,64], index: 7, kind: input, shape index: {}]   ;;  %s3478_s8 = inlined_call_operand.vmem [shape: f32[2,64,256], index: 8, kind: input, shape index: {}]   ;;  %s3479_s9 = inlined_call_operand.vmem [shape: f32[2,128,64], index: 9, kind: input, shape index: {}]   ;;  %s3480_s10 = inlined_call_operand.vmem [shape: f32[1,64], index: 10, kind: input, shape index: {}]   ;;  %s3481_s11 = inlined_call_operand.vmem [shape: f32[64,256], index: 11, kind: input, shape index: {}]   ;;  %s3482_s12 = inlined_call_operand.hbm [shape: f32[16,256], index: 12, kind: output, shape index: {}]  }
   0x1 LB: > { %3484 = sst [smem:[#allocation6_spill]] %s2846_s21  ;;  %s2938_s22 = sadd.s32 4294967295, %s2846_s21   ;;  %s2846_s21 = sphi %s2932_s21, %s23_s21  }
   0x2   : > { %p2318_p0 = scmp.ge.s32.totalorder %s2846_s21, 1  ;;  %p404_p1 = scmp.lt.s32.totalorder %s2846_s21, 3 }
   0x4   : > { %p405_p2 = pnand %p2318_p0, %p404_p1 }
   0x5   : > { %p462_p3 = scmp.lt.s32.totalorder (!%p405_p2), %s2938_s22, 1  ;;  %p2327_p4 = scmp.ne.s32.totalorder (!%p405_p2), %s2938_s22, 0 }
   0x6   : > { %408 = sbr.rel (%p405_p2) target bundleno = 3529 (0xdc9), region = 68 }
   0xd   : > { %s2944_s23 = scalar_select %p462_p3, %s2938_s22, 1 }
   0xe   : > { %491 = sbr.rel (%p2327_p4) target bundleno = 21 (0x15), region = 72  ;;  %v492_v0 = vld [vmem:[%s3470_s0] sm:$0xff] (!%p2327_p4)  ;;  %vm494_vm0 = vcmask (!%p2327_p4), 523264   ;;  %v493_v1 = vld [vmem:[%s3470_s0 + $0x8] sm:$0xff] (!%p2327_p4) }
   0xf   : > { %s2370_s27 = sshll.u32 %s2944_s23, 7  ;;  %s2371_s13 = sshll.u32 %s2944_s23, 6  ;;  %495 = vst.msk [vmem:[#allocation2] sm:$0xff] (!%p2327_p4), %vm494_vm0, %v492_v0  ;;  %496 = vst.msk [vmem:[#allocation2 + $0x8] sm:$0xff] (!%p2327_p4), %vm494_vm0, %v493_v1 }
  0x10   : > { %s2954_s30 = scalar_lea.vmem %s3475_s5, %s2370_s27  ;;  %s2960_s16 = scalar_lea.vmem %s3476_s6, %s2371_s13 }
  0x11   : > { %s477_s19 = scalar_lea.vmem %s3477_s7, %s2944_s23  ;;  %s2969_s25 = scalar_lea.vmem %s3478_s8, %s2370_s27 }
  0x12   : > { %s2974_s28 = scalar_lea.vmem %s3479_s9, %s2370_s27 }
  0x15 PF: > { %vm508_vm1 = vcmask 523264   ;;  %v533_v8 = vld [vmem:[%s2954_s30 + $0x8] sm:$0xff]  ;;  %v535_v9 = vld [vmem:[%s2954_s30 + $0x18] sm:$0xff]  ;;  %v532_v11 = vld [vmem:[%s2954_s30] sm:$0xff]  ;;  %v2848_v27 = vmov 0.0   ;;  %s3485_s27 = scalar_lea.vmem %s3474_s4, %s2944_s23  ;;  %s2850_s17 = smov 72  }
  0x16   : > { %v497_v2 = vld [vmem:[#allocation2] sm:$0xff]  ;;  %v498_v3 = vld [vmem:[#allocation2 + $0x8] sm:$0xff]  ;;  %v2544_v10 = vpack.c.bf16 %v535_v9, %v533_v8  ;;  %v534_v12 = vld [vmem:[%s2954_s30 + $0x10] sm:$0xff]  ;;  %618 = vmatprep.mubr.f32.mxu0 %v2848_v27  ;;  %s2851_s18 = smov 120   ;;  %s2852_s20 = smov 40   ;;  %vm651_vm2 = vcmask 64512  }
  0x17   : > { %v506_v4 = vmul.f32 %v497_v2, %v497_v2  ;;  %v507_v5 = vmul.f32 %v498_v3, %v498_v3  ;;  %v2546_v13 = vpack.c.bf16 %v534_v12, %v532_v11  ;;  %v537_v14 = vld [vmem:[%s2954_s30 + $0x28] sm:$0xff]  ;;  %v539_v15 = vld [vmem:[%s2954_s30 + $0x38] sm:$0xff]  ;;  %v536_v17 = vld [vmem:[%s2954_s30 + $0x20] sm:$0xff]  ;;  %s2853_s24 = smov 104   ;;  %s2854_s29 = smov 24   ;;  %vm700_vm3 = vcmask 130048  }
  0x18   : > { %2545 = vmatprep.subr.bf16.mxu0 %v2544_v10  ;;  %v2548_v16 = vpack.c.bf16 %v539_v15, %v537_v14  ;;  %v538_v18 = vld [vmem:[%s2954_s30 + $0x30] sm:$0xff]  ;;  %v541_v20 = vld [vmem:[%s2954_s30 + $0x48] sm:$0xff]  ;;  %v543_v21 = vld [vmem:[%s2954_s30 + $0x58] sm:$0xff]  ;;  %s2855_s15 = smov 64   ;;  %s2856_s21 = smov 80   ;;  %vm1749_vm5 = vcmask 261120  }
  0x19   : > { %v509_v6 = vsel %vm508_vm1, %v506_v4, 0.0  ;;  %v512_v7 = vsel %vm508_vm1, %v507_v5, 0.0  ;;  %2547 = vmatpush1.bf16.msra.mxu0 %v2546_v13  ;;  %v2550_v19 = vpack.c.bf16 %v538_v18, %v536_v17  ;;  %v540_v22 = vld [vmem:[%s2954_s30 + $0x40] sm:$0xff]  ;;  %v2552_v23 = vpack.c.bf16 %v543_v21, %v541_v20  ;;  %v542_v24 = vld [vmem:[%s2954_s30 + $0x50] sm:$0xff]  ;;  %v545_v25 = vld [vmem:[%s2954_s30 + $0x68] sm:$0xff]  ;;  %s2858_s13 = smov 88  }
  0x1a   : > { %510 = vadd.xlane.f32.xlu0 %v509_v6  ;;  %2549 = vmatprep.subr.bf16.mxu0 %v2548_v16  ;;  %v547_v26 = vld [vmem:[%s2954_s30 + $0x78] sm:$0xff]  ;;  %v2554_v28 = vpack.c.bf16 %v542_v24, %v540_v22  ;;  %v544_v30 = vld [vmem:[%s2954_s30 + $0x60] sm:$0xff]  ;;  %v546_v31 = vld [vmem:[%s2954_s30 + $0x70] sm:$0xff]  ;;  %s2849_s30 = smov 56   ;;  %s2859_s14 = smov 16   ;;  %vm1752_vm6 = vcmask 392192  }
  0x1b   : > { %v2556_v29 = vpack.c.bf16 %v547_v26, %v545_v25  ;;  %v2558_v32 = vpack.c.bf16 %v546_v31, %v544_v30  ;;  %v2328_v40 = vld [vmem:[%s3485_s27] ss:$0 sm:$0xff]  ;;  %v3046_v54 = vld [vmem:[%s3471_s1 + $0x8] sm:$0xff]  ;;  %s2862_s26 = smov 48   ;;  %vm3165_vm4 = vmpackc.low %vm700_vm3, %vm700_vm3  ;;  %p2362_p5 = scmp.ne.s32.totalorder %s2938_s22, 1 }
  0x1c   : > { %v3058_v55 = vld [vmem:[%s3471_s1] sm:$0xff]  ;;  %v3092_v8 = vld [vmem:[%s3472_s2 + $0x8] sm:$0xff] }
  0x1d   : > { %2551 = vmatpush1.bf16.msra.mxu0 %v2550_v19  ;;  %v3077_v58 = vld [vmem:[%s3472_s2] sm:$0xff] }
  0x1e   : > { %513 = vadd.xlane.f32.xlu0 %v512_v7  ;;  %2553 = vmatprep.subr.bf16.mxu0 %v2552_v23 }
  0x21   : > { %2555 = vmatpush1.bf16.msra.mxu0 %v2554_v28 }
  0x22   : > { %2557 = vmatprep.subr.bf16.mxu0 %v2556_v29 }
  0x25   : > { %2559 = vmatpush1.bf16.msra.mxu0 %v2558_v32 }
  0xa7   : > { %v511_v33 = vpop.xlane.xlu0 %510 }
  0xa8   : > { %v516_v34 = vmul.f32 0.015625, %v511_v33 }
  0xaa   : > { %v518_v35 = vadd.f32 1e-05, %v516_v34 }
  0xab   : > { %v514_v36 = vpop.xlane.xlu0 %513 }
  0xac   : > { %2756 = vrsqrt.f32 %v518_v35  ;;  %v517_v37 = vmul.f32 0.015625, %v514_v36 }
  0xae   : > { %v519_v38 = vadd.f32 1e-05, %v517_v37 }
  0xb0   : > { %2758 = vrsqrt.f32 %v519_v38 }
  0xb6   : > { %v2757_v39 = vpop.eup %2756 }
  0xb7   : > { %v522_v41 = vmul.f32 %v2757_v39, %v497_v2 }
  0xb9   : > { %v530_v42 = vmul.f32 %v2328_v40, %v522_v41 }
  0xba   : > { %v2759_v43 = vpop.eup %2758 }
  0xbb   : > { %2329 = vmatmul.mubr.msk.f32.vlgmr.msra.gmra.mrb[0].mxu0 %vm508_vm1, %v530_v42  ;;  %v523_v44 = vmul.f32 %v2759_v43, %v498_v3 }
  0xbc   : > { %624 = vmatprep.mubr.f32.mxu0 %v2848_v27 }
  0xbd   : > { %v531_v45 = vmul.f32 %v2328_v40, %v523_v44 }
  0xbf   : > { %2330 = vmatmul.mubr.msk.f32.gmra.mrb[2].mxu0 %vm508_vm1, %v531_v45 }
 0x18e   : > { %v3010_v46 = vpop.f32.mrb[0].mxu0 }
 0x18f   : > { %941 = vrot.lane.b32.xlu1 %v3010_v46, %s2849_s30  ;;  %674 = vrot.lane.b32.xlu0 %v3010_v46, %s2850_s17  ;;  %v622_v47 = vpop.f32.mrb[1].mxu0  ;;  %v3016_v48 = vsub.f32 0.0, %v3010_v46 }
 0x192   : > { %v3018_v49 = vpop.f32.mrb[2].mxu0 }
 0x193   : > { %907 = vrot.lane.b32.xlu0 %v3010_v46, %s2851_s18  ;;  %668 = vrot.lane.b32.xlu1 %v3016_v48, %s2849_s30  ;;  %v628_v50 = vpop.f32.mrb[3].mxu0  ;;  %v3030_v53 = vsub.f32 0.0, %v3018_v49 }
 0x194   : > { %v3023_v51 = vpack.c.bf16 %v628_v50, %v622_v47  ;;  %v3025_v52 = vpack.i.bf16 %v628_v50, %v622_v47 }
 0x197   : > { %935 = vrot.lane.b32.xlu1 %v3016_v48, %s2852_s20  ;;  %1221 = vrot.lane.b32.xlu0 %v3018_v49, %s2852_s20 }
 0x19b   : > { %901 = vrot.lane.b32.xlu1 %v3016_v48, %s2853_s24  ;;  %1215 = vrot.lane.b32.xlu0 %v3030_v53, %s2854_s29 }
 0x19f   : > { %676 = vrot.lane.b32.xlu1 %v3018_v49, %s2850_s17  ;;  %909 = vrot.lane.b32.xlu0 %v3018_v49, %s2851_s18 }
 0x1a3   : > { %943 = vrot.lane.b32.xlu1 %v3018_v49, %s2849_s30  ;;  %1185 = vrot.lane.b32.xlu0 %v3010_v46, %s2853_s24 }
 0x1a7   : > { %1187 = vrot.lane.b32.xlu0 %v3018_v49, %s2853_s24  ;;  %670 = vrot.lane.b32.xlu1 %v3030_v53, %s2849_s30  ;;  %s2857_s30 = smov 96  }
 0x1ab   : > { %662 = vrot.lane.b32.xlu0 %v3046_v54, %s2855_s15  ;;  %937 = vrot.lane.b32.xlu1 %v3030_v53, %s2852_s20 }
 0x1af   : > { %929 = vrot.lane.b32.xlu0 %v3046_v54, %s2856_s21  ;;  %1213 = vrot.lane.b32.xlu1 %v3016_v48, %s2854_s29 }
 0x1b3   : > { %1205 = vrot.lane.b32.xlu0 %v3058_v55, %s2857_s30  ;;  %1219 = vrot.lane.b32.xlu1 %v3010_v46, %s2852_s20  ;;  %s2860_s20 = smov 32  }
 0x1b7   : > { %903 = vrot.lane.b32.xlu1 %v3030_v53, %s2853_s24  ;;  %s2861_s24 = smov 8  }
 0x1bb   : > { %1179 = vrot.lane.b32.xlu1 %v3016_v48, %s2858_s13 }
 0x1bf   : > { %1181 = vrot.lane.b32.xlu1 %v3030_v53, %s2858_s13 }
 0x1c3   : > { %660 = vrot.lane.b32.xlu1 %v3058_v55, %s2855_s15 }
 0x1c7   : > { %927 = vrot.lane.b32.xlu1 %v3058_v55, %s2856_s21 }
 0x1cb   : > { %893 = vrot.lane.b32.xlu1 %v3058_v55, %s2859_s14 }
 0x201   : > { %v942_v56 = vpop.permute.xlu1 %941  ;;  %v675_v57 = vpop.permute.xlu0 %674 }
 0x205   : > { %v669_v59 = vpop.permute.xlu1 %668  ;;  %v908_v62 = vpop.permute.xlu0 %907 }
 0x206   : > { %v680_v60 = vsel %vm651_vm2, %v669_v59, %v675_v57 }
 0x207   : > { %v682_v61 = vmul.f32 %v680_v60, %v3077_v58 }
 0x209   : > { %v936_v63 = vpop.permute.xlu1 %935  ;;  %686 = vrot.lane.b32.xlu1 %v682_v61, %s2855_s15  ;;  %v1222_v2 = vpop.permute.xlu0 %1221 }
 0x20a   : > { %v947_v0 = vsel %vm651_vm2, %v936_v63, %v942_v56 }
 0x20b   : > { %v949_v1 = vmul.f32 %v947_v0, %v3077_v58 }
 0x20d   : > { %v902_v3 = vpop.permute.xlu1 %901  ;;  %953 = vrot.lane.b32.xlu1 %v949_v1, %s2856_s21  ;;  %v1216_v7 = vpop.permute.xlu0 %1215 }
 0x20e   : > { %v913_v4 = vsel %vm651_vm2, %v902_v3, %v908_v62  ;;  %v1226_v9 = vsel %vm651_vm2, %v1216_v7, %v1222_v2 }
 0x20f   : > { %v915_v6 = vmul.f32 %v913_v4, %v3077_v58  ;;  %v1228_v11 = vmul.f32 %v1226_v9, %v3092_v8 }
 0x211   : > { %v677_v5 = vpop.permute.xlu1 %676  ;;  %1207 = vrot.lane.b32.xlu1 %v3046_v54, %s2857_s30  ;;  %v910_v19 = vpop.permute.xlu0 %909 }
 0x215   : > { %v944_v10 = vpop.permute.xlu1 %943  ;;  %919 = vrot.lane.b32.xlu1 %v915_v6, %s2859_s14  ;;  %v1186_v25 = vpop.permute.xlu0 %1185 }
 0x219   : > { %v671_v12 = vpop.permute.xlu1 %670  ;;  %1233 = vrot.lane.b32.xlu1 %v1228_v11, %s2857_s30  ;;  %v1188_v31 = vpop.permute.xlu0 %1187 }
 0x21a   : > { %v681_v13 = vsel %vm651_vm2, %v671_v12, %v677_v5 }
 0x21b   : > { %v683_v14 = vmul.f32 %v681_v13, %v3092_v8 }
 0x21d   : > { %688 = vrot.lane.b32.xlu0 %v683_v14, %s2855_s15  ;;  %v938_v15 = vpop.permute.xlu1 %937  ;;  %1171 = vrot.lane.b32.xlu1 %v3058_v55, %s2860_s20  ;;  %v663_v38 = vpop.permute.xlu0 %662 }
 0x21e   : > { %v948_v16 = vsel %vm651_vm2, %v938_v15, %v944_v10  ;;  %v667_v44 = vmul.f32 %v663_v38, %v3018_v49 }
 0x21f   : > { %v950_v17 = vmul.f32 %v948_v16, %v3092_v8 }
 0x221   : > { %955 = vrot.lane.b32.xlu0 %v950_v17, %s2856_s21  ;;  %v1214_v18 = vpop.permute.xlu1 %1213  ;;  %v930_v40 = vpop.permute.xlu0 %929 }
 0x222   : > { %v934_v57 = vmul.f32 %v930_v40, %v3018_v49 }
 0x225   : > { %895 = vrot.lane.b32.xlu0 %v3046_v54, %s2859_s14  ;;  %v1220_v20 = vpop.permute.xlu1 %1219  ;;  %v1206_v42 = vpop.permute.xlu0 %1205 }
 0x226   : > { %v1225_v21 = vsel %vm651_vm2, %v1214_v18, %v1220_v20  ;;  %v1211_v4 = vmul.f32 %v1206_v42, %v3010_v46 }
 0x227   : > { %v1227_v22 = vmul.f32 %v1225_v21, %v3077_v58 }
 0x229   : > { %1231 = vrot.lane.b32.xlu0 %v1227_v22, %s2857_s30  ;;  %v904_v23 = vpop.permute.xlu1 %903 }
 0x22a   : > { %v914_v24 = vsel %vm651_vm2, %v904_v23, %v910_v19 }
 0x22b   : > { %v916_v26 = vmul.f32 %v914_v24, %v3092_v8 }
 0x22d   : > { %v1180_v28 = vpop.permute.xlu1 %1179  ;;  %921 = vrot.lane.b32.xlu0 %v916_v26, %s2859_s14 }
 0x22e   : > { %v1191_v29 = vsel %vm651_vm2, %v1180_v28, %v1186_v25 }
 0x22f   : > { %v1193_v30 = vmul.f32 %v1191_v29, %v3077_v58 }
 0x231   : > { %v1182_v32 = vpop.permute.xlu1 %1181  ;;  %1173 = vrot.lane.b32.xlu0 %v3046_v54, %s2860_s20  ;;  %1197 = vrot.lane.b32.xlu1 %v1193_v30, %s2860_s20 }
 0x232   : > { %v1192_v33 = vsel %vm651_vm2, %v1182_v32, %v1188_v31 }
 0x233   : > { %v1194_v34 = vmul.f32 %v1192_v33, %v3092_v8 }
 0x235   : > { %1199 = vrot.lane.b32.xlu0 %v1194_v34, %s2860_s20  ;;  %v661_v35 = vpop.permute.xlu1 %660  ;;  %v631_v34 = vmul.f32 %v3010_v46, %v3058_v55 }
 0x236   : > { %v666_v45 = vmul.f32 %v661_v35, %v3010_v46 }
 0x239   : > { %637 = vrot.lane.b32.xlu0 %v3016_v48, %s2851_s18  ;;  %v928_v36 = vpop.permute.xlu1 %927 }
 0x23a   : > { %v933_v59 = vmul.f32 %v928_v36, %v3010_v46 }
 0x23d   : > { %v894_v37 = vpop.permute.xlu1 %893 }
 0x23e   : > { %v899_v7 = vmul.f32 %v894_v37, %v3010_v46 }
 0x27b   : > { %v687_v39 = vpop.permute.xlu1 %686 }
 0x27c   : > { %v692_v50 = vadd.f32 %v687_v39, %v666_v45 }
 0x27f   : > { %v954_v41 = vpop.permute.xlu1 %953 }
 0x280   : > { %v959_v63 = vadd.f32 %v954_v41, %v933_v59  ;;  %v632_v41 = vmul.f32 %v3018_v49, %v3046_v54 }
 0x283   : > { %v1208_v43 = vpop.permute.xlu1 %1207 }
 0x284   : > { %v1212_v5 = vmul.f32 %v1208_v43, %v3018_v49 }
 0x287   : > { %v920_v61 = vpop.permute.xlu1 %919 }
 0x288   : > { %v925_v11 = vadd.f32 %v920_v61, %v899_v7 }
 0x28b   : > { %v1234_v3 = vpop.permute.xlu1 %1233 }
 0x28c   : > { %v1238_v9 = vadd.f32 %v1234_v3, %v1212_v5 }
 0x28f   : > { %v689_v47 = vpop.permute.xlu0 %688  ;;  %v1172_v13 = vpop.permute.xlu1 %1171 }
 0x290   : > { %v693_v56 = vadd.f32 %v689_v47, %v667_v44  ;;  %v1177_v16 = vmul.f32 %v1172_v13, %v3010_v46 }
 0x292   : > { %v2721_v60 = vpack.i.bf16 %v693_v56, %v692_v50 }
 0x293   : > { %v956_v62 = vpop.permute.xlu0 %955 }
 0x294   : > { %v960_v0 = vadd.f32 %v956_v62, %v934_v57  ;;  %2722 = vrot.lane.b32.xlu1 %v2721_v60, %s2855_s15  ;;  %s2863_s15 = smov 112  }
 0x296   : > { %v2726_v1 = vpack.i.bf16 %v960_v0, %v959_v63 }
 0x297   : > { %v896_v2 = vpop.permute.xlu0 %895 }
 0x298   : > { %645 = vrot.lane.b32.xlu1 %v3010_v46, %s2861_s24  ;;  %2727 = vrot.lane.b32.xlu0 %v2726_v1, %s2862_s26  ;;  %v900_v15 = vmul.f32 %v896_v2, %v3018_v49 }
 0x29b   : > { %v1232_v6 = vpop.permute.xlu0 %1231 }
 0x29c   : > { %v1237_v10 = vadd.f32 %v1232_v6, %v1211_v4  ;;  %639 = vrot.lane.b32.xlu1 %v3030_v53, %s2851_s18  ;;  %647 = vrot.lane.b32.xlu0 %v3018_v49, %s2861_s24  ;;  %v3207_v6 = vld [vmem:[%s3473_s3] sm:$0xff] }
 0x29e   : > { %v2731_v12 = vpack.i.bf16 %v1238_v9, %v1237_v10 }
 0x29f   : > { %v922_v14 = vpop.permute.xlu0 %921 }
 0x2a0   : > { %963 = vrot.lane.b32.xlu1 %v925_v11, %s2863_s15  ;;  %2732 = vrot.lane.b32.xlu0 %v2731_v12, %s2860_s20  ;;  %v926_v17 = vadd.f32 %v922_v14, %v900_v15 }
 0x2a3   : > { %v1198_v18 = vpop.permute.xlu1 %1197  ;;  %v1174_v19 = vpop.permute.xlu0 %1173 }
 0x2a4   : > { %v1203_v20 = vadd.f32 %v1198_v18, %v1177_v16  ;;  %965 = vrot.lane.b32.xlu1 %v926_v17, %s2863_s15  ;;  %v1178_v21 = vmul.f32 %v1174_v19, %v3018_v49 }
 0x2a6   : > { %1241 = vrot.lane.b32.xlu0 %v1203_v20, %s2857_s30 }
 0x2a7   : > { %v1200_v22 = vpop.permute.xlu0 %1199 }
 0x2a8   : > { %v1204_v23 = vadd.f32 %v1200_v22, %v1178_v21 }
 0x2aa   : > { %1491 = vrot.lane.b32.xlu0 %v3030_v53, %s2861_s24  ;;  %1243 = vrot.lane.b32.xlu1 %v1204_v23, %s2857_s30 }
 0x2ab   : > { %v638_v24 = vpop.permute.xlu0 %637 }
 0x2ae   : > { %1455 = vrot.lane.b32.xlu0 %v3016_v48, %s2850_s17  ;;  %1489 = vrot.lane.b32.xlu1 %v3016_v48, %s2861_s24 }
 0x2b2   : > { %1457 = vrot.lane.b32.xlu0 %v3030_v53, %s2850_s17  ;;  %1495 = vrot.lane.b32.xlu1 %v3010_v46, %s2854_s29 }
 0x2b6   : > { %1497 = vrot.lane.b32.xlu1 %v3018_v49, %s2854_s29 }
 0x2ba   : > { %1461 = vrot.lane.b32.xlu1 %v3010_v46, %s2858_s13 }
 0x2be   : > { %1463 = vrot.lane.b32.xlu1 %v3018_v49, %s2858_s13 }
 0x306   : > { %v2723_v25 = vpop.permute.xlu1 %2722 }
 0x307   : > { %v2725_v26 = vunpack.i.h.bf16 %v2723_v25  ;;  %v2724_v48 = vunpack.i.l.bf16 %v2723_v25 }
 0x309   : > { %v2560_v28 = vpack.c.bf16 %v2725_v26, %v2724_v48 }
 0x30a   : > { %v646_v29 = vpop.permute.xlu1 %645  ;;  %v2728_v30 = vpop.permute.xlu0 %2727 }
 0x30b   : > { %v652_v31 = vsel %vm651_vm2, %v638_v24, %v646_v29  ;;  %v2730_v32 = vunpack.i.h.bf16 %v2728_v30  ;;  %v2729_v33 = vunpack.i.l.bf16 %v2728_v30  ;;  %2562 = vmatprep.subr.msk.bf16.mxu0 %vm3165_vm4, %v2560_v28 }
 0x30c   : > { %v654_v35 = vmul.f32 %v652_v31, %v3077_v58  ;;  %2565 = vmatpush3.bf16.xpose.msk.msra.mxu0 %vm3165_vm4, %v2560_v28 }
 0x30d   : > { %2567 = vmatprep.subr.bf16.mxu0 %v3023_v51  ;;  %v2570_v36 = vpack.c.bf16 %v2730_v32, %v2729_v33 }
 0x30e   : > { %v656_v37 = vadd.f32 %v654_v35, %v631_v34  ;;  %v640_v38 = vpop.permute.xlu1 %639  ;;  %v648_v39 = vpop.permute.xlu0 %647 }
 0x30f   : > { %v653_v40 = vsel %vm651_vm2, %v640_v38, %v648_v39  ;;  %2572 = vmatprep.subr.msk.bf16.mxu1 %vm3165_vm4, %v2570_v36 }
 0x310   : > { %v655_v42 = vmul.f32 %v653_v40, %v3092_v8  ;;  %2438 = vmatprep.mubr.msk.f32.mxu0 %vm700_vm3, %v656_v37  ;;  %2575 = vmatpush3.bf16.xpose.msk.msra.mxu1 %vm3165_vm4, %v2570_v36 }
 0x312   : > { %v657_v43 = vadd.f32 %v655_v42, %v632_v41  ;;  %v964_v44 = vpop.permute.xlu1 %963  ;;  %v2733_v45 = vpop.permute.xlu0 %2732 }
 0x313   : > { %v2735_v47 = vunpack.i.h.bf16 %v2733_v45  ;;  %v2734_v50 = vunpack.i.l.bf16 %v2733_v45  ;;  %2452 = vmatprep.mubr.msk.f32.mxu1 %vm700_vm3, %v964_v44 }
 0x314   : > { %2439 = vmatmul.mubr.msk.f32.vlgmr.msra.gmra.mrb[4].mxu0 %vm700_vm3, %v657_v43 }
 0x315   : > { %v2580_v56 = vpack.c.bf16 %v2735_v47, %v2734_v50  ;;  %2569 = vmatpush3.bf16.msra.mxu0 %v3023_v51  ;;  %v3200_v51 = vld [vmem:[%s3473_s3 + $0x8] sm:$0xff] }
 0x316   : > { %v966_v57 = vpop.permute.xlu1 %965 }
 0x317   : > { %2453 = vmatmul.mubr.msk.f32.vlgmr.msra.gmra.mrb[0].mxu1 %vm700_vm3, %v966_v57  ;;  %2582 = vmatprep.subr.msk.bf16.mxu1 %vm3165_vm4, %v2580_v56 }
 0x318   : > { %v1242_v59 = vpop.permute.xlu0 %1241  ;;  %2585 = vmatpush3.bf16.xpose.msk.msra.mxu1 %vm3165_vm4, %v2580_v56 }
 0x319   : > { %2466 = vmatprep.mubr.msk.f32.mxu1 %vm700_vm3, %v1242_v59 }
 0x31c   : > { %v1244_v60 = vpop.permute.xlu1 %1243  ;;  %v1492_v25 = vpop.permute.xlu0 %1491 }
 0x31f   : > { %2467 = vmatmul.mubr.msk.f32.vlgmr.msra.gmra.mrb[2].mxu1 %vm700_vm3, %v1244_v60 }
 0x320   : > { %v1490_v18 = vpop.permute.xlu1 %1489  ;;  %v1456_v29 = vpop.permute.xlu0 %1455 }
 0x324   : > { %v1496_v20 = vpop.permute.xlu1 %1495  ;;  %v1458_v32 = vpop.permute.xlu0 %1457 }
 0x325   : > { %v1501_v35 = vsel %vm651_vm2, %v1490_v18, %v1496_v20 }
 0x326   : > { %v1503_v36 = vmul.f32 %v1501_v35, %v3077_v58 }
 0x328   : > { %v1498_v23 = vpop.permute.xlu1 %1497 }
 0x329   : > { %v1502_v28 = vsel %vm651_vm2, %v1492_v25, %v1498_v23 }
 0x32a   : > { %v1504_v30 = vmul.f32 %v1502_v28, %v3092_v8 }
 0x32c   : > { %v1462_v48 = vpop.permute.xlu1 %1461 }
 0x32d   : > { %v1467_v37 = vsel %vm651_vm2, %v1456_v29, %v1462_v48 }
 0x330   : > { %v1464_v31 = vpop.permute.xlu1 %1463 }
 0x331   : > { %v1468_v33 = vsel %vm651_vm2, %v1458_v32, %v1464_v31 }
 0x332   : > { %v1470_v34 = vmul.f32 %v1468_v33, %v3092_v8 }
 0x3e7   : > { %v2440_v61 = vpop.f32.mrb[4].mxu0 }
 0x3e8   : > { %v787_v62 = vmul.f32 0.25, %v2440_v61  ;;  %v777_v63 = vpop.f32.mrb[5].mxu0 }
 0x3e9   : > { %v786_v2 = vmul.f32 0.25, %v777_v63 }
 0x3ea   : > { %v2454_v0 = vpop.f32.mrb[0].mxu1  ;;  %v789_v1 = vadd.f32 %v787_v62, %v3200_v51 }
 0x3eb   : > { %v1057_v3 = vmul.f32 0.25, %v2454_v0  ;;  %v1047_v4 = vpop.f32.mrb[1].mxu1  ;;  %v788_v11 = vadd.f32 %v786_v2, %v3207_v6 }
 0x3ec   : > { %v793_v5 = vsel %vm700_vm3, %v789_v1, -inf  ;;  %v1056_v9 = vmul.f32 0.25, %v1047_v4 }
 0x3ed   : > { %794 = vmax.xlane.f32.xlu1 %v793_v5  ;;  %v1059_v7 = vadd.f32 %v1057_v3, %v3200_v51  ;;  %v790_v14 = vsel %vm700_vm3, %v788_v11, -inf }
 0x3ee   : > { %v1058_v15 = vadd.f32 %v1056_v9, %v3207_v6 }
 0x3ef   : > { %v1063_v10 = vsel %vm700_vm3, %v1059_v7, -inf }
 0x3f0   : > { %1064 = vmax.xlane.f32.xlu0 %v1063_v10  ;;  %v1060_v16 = vsel %vm700_vm3, %v1058_v15, -inf }
 0x3f2   : > { %v2468_v12 = vpop.f32.mrb[2].mxu1 }
 0x3f3   : > { %v1325_v13 = vpop.f32.mrb[3].mxu1  ;;  %v1335_v17 = vmul.f32 0.25, %v2468_v12 }
 0x3f4   : > { %791 = vmax.xlane.f32.xlu0 %v790_v14  ;;  %v1334_v22 = vmul.f32 0.25, %v1325_v13 }
 0x3f5   : > { %v1337_v19 = vadd.f32 %v1335_v17, %v3200_v51 }
 0x3f6   : > { %v3222_v24 = vadd.f32 %v1334_v22, %v3207_v6 }
 0x3f7   : > { %v1341_v21 = vsel %vm700_vm3, %v1337_v19, -inf }
 0x3f8   : > { %1061 = vmax.xlane.f32.xlu0 %v1060_v16  ;;  %v1338_v26 = vsel %vm700_vm3, %v3222_v24, -inf }
 0x3fe   : > { %1483 = vrot.lane.b32.xlu1 %v3046_v54, %s2863_s15 }
 0x40e   : > { %1481 = vrot.lane.b32.xlu0 %v3058_v55, %s2863_s15 }
 0x422   : > { %1342 = vmax.xlane.f32.xlu1 %v1341_v21 }
 0x42d   : > { %1339 = vmax.xlane.f32.xlu0 %v1338_v26 }
 0x433   : > { %1509 = vrot.lane.b32.xlu1 %v1504_v30, %s2863_s15 }
 0x437   : > { %1449 = vrot.lane.b32.xlu1 %v3046_v54, %s2862_s26  ;;  %v1469_v54 = vmul.f32 %v1467_v37, %v3077_v58 }
 0x43b   : > { %1475 = vrot.lane.b32.xlu1 %v1470_v34, %s2862_s26 }
 0x43f   : > { %2737 = vrot.lane.b32.xlu1 %v3025_v52, %s2863_s15 }
 0x443   : > { %1507 = vrot.lane.b32.xlu0 %v1503_v36, %s2863_s15 }
 0x447   : > { %1447 = vrot.lane.b32.xlu0 %v3058_v55, %s2862_s26 }
 0x44b   : > { %1473 = vrot.lane.b32.xlu0 %v1469_v54, %s2862_s26 }
 0x47a   : > { %v795_v8 = vpop.xlane.xlu1 %794 }
 0x47b   : > { %v797_v38 = vsub.f32 %v789_v1, %v795_v8 }
 0x47d   : > { %v800_v39 = vmul.f32 1.442695, %v797_v38  ;;  %v1065_v40 = vpop.xlane.xlu0 %1064 }
 0x47e   : > { %v1067_v41 = vsub.f32 %v1059_v7, %v1065_v40  ;;  %v1484_v0 = vpop.permute.xlu1 %1483 }
 0x47f   : > { %2760 = vpow2.f32 %v800_v39 }
 0x480   : > { %v1070_v42 = vmul.f32 1.442695, %v1067_v41 }
 0x481   : > { %v792_v43 = vpop.xlane.xlu0 %791 }
 0x482   : > { %2762 = vpow2.f32 %v1070_v42  ;;  %v796_v44 = vsub.f32 %v788_v11, %v792_v43  ;;  %v1488_v11 = vmul.f32 %v1484_v0, %v3018_v49 }
 0x484   : > { %v798_v45 = vmul.f32 1.442695, %v796_v44 }
 0x485   : > { %v1062_v47 = vpop.xlane.xlu0 %1061 }
 0x486   : > { %2764 = vpow2.f32 %v798_v45  ;;  %v1066_v50 = vsub.f32 %v1058_v15, %v1062_v47 }
 0x488   : > { %v1068_v56 = vmul.f32 1.442695, %v1066_v50 }
 0x489   : > { %v3244_v55 = vpop.eup %2760  ;;  %v1482_v5 = vpop.permute.xlu0 %1481 }
 0x48a   : > { %2766 = vpow2.f32 %v1068_v56  ;;  %v805_v58 = vsel %vm700_vm3, %v3244_v55, 0.0  ;;  %v1487_v12 = vmul.f32 %v1482_v5, %v3010_v46 }
 0x48b   : > { %806 = vadd.xlane.f32.xlu1 %v805_v58 }
 0x48c   : > { %v3248_v57 = vpop.eup %2762 }
 0x48d   : > { %v1075_v59 = vsel %vm700_vm3, %v3248_v57, 0.0 }
 0x48e   : > { %1076 = vadd.xlane.f32.xlu0 %v1075_v59 }
 0x490   : > { %v2765_v60 = vpop.eup %2764 }
 0x491   : > { %v802_v61 = vsel %vm700_vm3, %v2765_v60, 0.0 }
 0x492   : > { %803 = vadd.xlane.f32.xlu0 %v802_v61 }
 0x494   : > { %v2767_v62 = vpop.eup %2766 }
 0x495   : > { %v1072_v63 = vsel %vm700_vm3, %v2767_v62, 0.0 }
 0x496   : > { %1073 = vadd.xlane.f32.xlu0 %v1072_v63 }
 0x4af   : > { %v1343_v1 = vpop.xlane.xlu1 %1342 }
 0x4b0   : > { %v1345_v2 = vsub.f32 %v1337_v19, %v1343_v1 }
 0x4b2   : > { %v1348_v3 = vmul.f32 1.442695, %v1345_v2 }
 0x4b3   : > { %v1510_v4 = vpop.permute.xlu1 %1509 }
 0x4b4   : > { %2768 = vpow2.f32 %v1348_v3  ;;  %v1514_v15 = vadd.f32 %v1510_v4, %v1488_v11 }
 0x4b7   : > { %v1450_v7 = vpop.permute.xlu1 %1449 }
 0x4b8   : > { %v1454_v26 = vmul.f32 %v1450_v7, %v3018_v49 }
 0x4ba   : > { %v1340_v9 = vpop.xlane.xlu0 %1339 }
 0x4bb   : > { %v1476_v10 = vpop.permute.xlu1 %1475  ;;  %v1344_v23 = vsub.f32 %v3222_v24, %v1340_v9 }
 0x4bc   : > { %v1480_v48 = vadd.f32 %v1476_v10, %v1454_v26 }
 0x4bd   : > { %v1346_v25 = vmul.f32 1.442695, %v1344_v23 }
 0x4be   : > { %v3256_v13 = vpop.eup %2768  ;;  %v1508_v14 = vpop.permute.xlu0 %1507 }
 0x4bf   : > { %v1513_v16 = vadd.f32 %v1508_v14, %v1487_v12  ;;  %v2738_v17 = vpop.permute.xlu1 %2737  ;;  %v1353_v18 = vsel %vm700_vm3, %v3256_v13, 0.0  ;;  %2770 = vpow2.f32 %v1346_v25 }
 0x4c0   : > { %v2740_v19 = vunpack.i.h.bf16 %v2738_v17  ;;  %v2739_v20 = vunpack.i.l.bf16 %v2738_v17  ;;  %1354 = vadd.xlane.f32.xlu0 %v1353_v18 }
 0x4c1   : > { %v2746_v21 = vpack.i.bf16 %v1514_v15, %v1513_v16 }
 0x4c2   : > { %v2576_v22 = vpack.c.bf16 %v2740_v19, %v2739_v20  ;;  %v1448_v30 = vpop.permute.xlu0 %1447 }
 0x4c3   : > { %2747 = vrot.lane.b32.xlu1 %v2746_v21, %s2859_s14  ;;  %v1453_v32 = vmul.f32 %v1448_v30, %v3010_v46 }
 0x4c4   : > { %2577 = vmatprep.subr.bf16.mxu0 %v2576_v22 }
 0x4c6   : > { %v1474_v31 = vpop.permute.xlu0 %1473 }
 0x4c7   : > { %v1479_v33 = vadd.f32 %v1474_v31, %v1453_v32 }
 0x4c9   : > { %v2771_v28 = vpop.eup %2770 }
 0x4ca   : > { %v1350_v29 = vsel %vm700_vm3, %v2771_v28, 0.0 }
 0x4d6   : > { %2742 = vrot.lane.b32.xlu0 %v3025_v52, %s2857_s30 }
 0x4da   : > { %1519 = vrot.lane.b32.xlu0 %v1480_v48, %s2856_s21 }
 0x4e7   : > { %1351 = vadd.xlane.f32.xlu1 %v1350_v29 }
 0x4f8   : > { %1517 = vrot.lane.b32.xlu1 %v1479_v33, %s2856_s21  ;;  %v1755_v33 = vld [vmem:[%s2960_s16] sm:$0xff] }
 0x518   : > { %v807_v49 = vpop.xlane.xlu1 %806 }
 0x519   : > { %2772 = vrcp.f32 %v807_v49  ;;  %v1757_v49 = vld [vmem:[%s2960_s16 + $0x10] sm:$0xff] }
 0x51b   : > { %v1077_v24 = vpop.xlane.xlu0 %1076 }
 0x51f   : > { %v804_v34 = vpop.xlane.xlu0 %803 }
 0x520   : > { %2774 = vrcp.f32 %v804_v34 }
 0x521   : > { %2776 = vrcp.f32 %v1077_v24  ;;  %v1756_v24 = vld [vmem:[%s2960_s16 + $0x8] sm:$0xff] }
 0x522   : > { %v2600_v34 = vpack.c.bf16 %v1756_v24, %v1755_v33 }
 0x523   : > { %v1074_v35 = vpop.xlane.xlu0 %1073  ;;  %v2773_v36 = vpop.eup %2772 }
 0x524   : > { %2778 = vrcp.f32 %v1074_v35  ;;  %v811_v8 = vmul.f32 %v2773_v36, %v3244_v55  ;;  %v1758_v35 = vld [vmem:[%s2960_s16 + $0x18] sm:$0xff] }
 0x525   : > { %v2604_v36 = vpack.c.bf16 %v1758_v35, %v1757_v49 }
 0x52a   : > { %v2775_v37 = vpop.eup %2774 }
 0x52b   : > { %v810_v54 = vmul.f32 %v2775_v37, %v2765_v60  ;;  %v2777_v38 = vpop.eup %2776  ;;  %v1759_v37 = vld [vmem:[%s2960_s16 + $0x20] sm:$0xff] }
 0x52c   : > { %v1081_v40 = vmul.f32 %v2777_v38, %v3248_v57  ;;  %v1761_v38 = vld [vmem:[%s2960_s16 + $0x30] sm:$0xff] }
 0x52d   : > { %2445 = vmatprep.mubr.msk.f32.mxu0 %vm700_vm3, %v810_v54  ;;  %v1760_v54 = vld [vmem:[%s2960_s16 + $0x28] sm:$0xff] }
 0x52e   : > { %v2779_v46 = vpop.eup %2778  ;;  %2446 = vmatmul.mubr.msk.f32.vlgmr.msra.gmra.mrb[6].mxu0 %vm700_vm3, %v811_v8  ;;  %v2608_v8 = vpack.c.bf16 %v1760_v54, %v1759_v37 }
 0x52f   : > { %2579 = vmatpush3.bf16.msra.mxu0 %v2576_v22  ;;  %v1080_v39 = vmul.f32 %v2779_v46, %v2767_v62  ;;  %v1762_v46 = vld [vmem:[%s2960_s16 + $0x38] sm:$0xff] }
 0x531   : > { %2459 = vmatprep.mubr.msk.f32.mxu0 %vm700_vm3, %v1080_v39  ;;  %v2612_v39 = vpack.c.bf16 %v1762_v46, %v1761_v38  ;;  %v1986_v46 = vld [vmem:[%s2974_s28] sm:$0xff] }
 0x532   : > { %2460 = vmatmul.mubr.msk.f32.vlgmr.msra.gmra.mrb[8].mxu0 %vm700_vm3, %v1081_v40 }
 0x535   : > { %v2748_v42 = vpop.permute.xlu1 %2747 }
 0x536   : > { %v2750_v44 = vunpack.i.h.bf16 %v2748_v42  ;;  %v2749_v45 = vunpack.i.l.bf16 %v2748_v42 }
 0x538   : > { %v2590_v55 = vpack.c.bf16 %v2750_v44, %v2749_v45 }
 0x54d   : > { %v1355_v41 = vpop.xlane.xlu0 %1354 }
 0x54e   : > { %2780 = vrcp.f32 %v1355_v41 }
 0x551   : > { %v2743_v43 = vpop.permute.xlu0 %2742 }
 0x552   : > { %v2745_v47 = vunpack.i.h.bf16 %v2743_v43  ;;  %v2744_v50 = vunpack.i.l.bf16 %v2743_v43 }
 0x554   : > { %v2586_v56 = vpack.c.bf16 %v2745_v47, %v2744_v50 }
 0x555   : > { %v1520_v63 = vpop.permute.xlu0 %1519 }
 0x556   : > { %2587 = vmatprep.subr.bf16.mxu0 %v2586_v56 }
 0x557   : > { %2589 = vmatpush3.bf16.msra.mxu0 %v2586_v56 }
 0x558   : > { %2592 = vmatprep.subr.msk.bf16.mxu0 %vm3165_vm4, %v2590_v55  ;;  %v2781_v57 = vpop.eup %2780 }
 0x559   : > { %v1359_v61 = vmul.f32 %v2781_v57, %v3256_v13 }
 0x574   : > { %v1352_v58 = vpop.xlane.xlu1 %1351 }
 0x575   : > { %2782 = vrcp.f32 %v1352_v58 }
 0x578   : > { %v1518_v62 = vpop.permute.xlu1 %1517 }
 0x57f   : > { %v2783_v59 = vpop.eup %2782 }
 0x580   : > { %v1358_v60 = vmul.f32 %v2783_v59, %v2771_v28 }
 0x582   : > { %2473 = vmatprep.mubr.msk.f32.mxu0 %vm700_vm3, %v1358_v60 }
 0x583   : > { %2474 = vmatmul.mubr.msk.f32.vlgmr.msra.gmra.mrb[10].mxu0 %vm700_vm3, %v1359_v61 }
 0x584   : > { %2595 = vmatpush3.bf16.xpose.msk.msra.mxu0 %vm3165_vm4, %v2590_v55  ;;  %2480 = vmatprep.mubr.msk.f32.mxu0 %vm700_vm3, %v1518_v62  ;;  %v2804_v62 = vld [vmem:[#allocation2 + $0x8] sm:$0xff] }
 0x58b   : > { %2481 = vmatmul.mubr.msk.f32.vlgmr.msra.gmra.mrb[12].mxu0 %vm700_vm3, %v1520_v63 }
 0x58c   : > { %1957 = vmatprep.mubr.f32.mxu0 %v2848_v27 }
 0x601   : > { %v3285_v0 = vpop.f32.mrb[6].mxu0 }
 0x602   : > { %v3287_v1 = vpop.f32.mrb[7].mxu0 }
 0x605   : > { %v2461_v2 = vpop.f32.mrb[8].mxu0 }
 0x606   : > { %v1162_v3 = vpop.f32.mrb[9].mxu0 }
 0x656   : > { %v2475_v4 = vpop.f32.mrb[10].mxu0 }
 0x657   : > { %v1438_v5 = vpop.f32.mrb[11].mxu0 }
 0x65e   : > { %v2482_v7 = vpop.f32.mrb[12].mxu0 }
 0x65f   : > { %v1611_v9 = vmul.f32 0.25, %v2482_v7  ;;  %v1601_v10 = vpop.f32.mrb[13].mxu0 }
 0x660   : > { %v1610_v53 = vmul.f32 0.25, %v1601_v10  ;;  %v1874_v10 = vld [vmem:[%s2969_s25 + $0x18] sm:$0xff] }
 0x661   : > { %v1613_v11 = vadd.f32 %v1611_v9, %v3200_v51  ;;  %v1872_v9 = vld [vmem:[%s2969_s25 + $0x8] sm:$0xff] }
 0x662   : > { %v1612_v12 = vadd.f32 %v1610_v53, %v3207_v6  ;;  %v2616_v53 = vpack.c.bf16 %v1874_v10, %v1872_v9 }
 0x663   : > { %v1617_v13 = vsel %vm700_vm3, %v1613_v11, -inf }
 0x664   : > { %1618 = vmax.xlane.f32.xlu0 %v1617_v13  ;;  %v1614_v14 = vsel %vm700_vm3, %v1612_v12, -inf  ;;  %2617 = vmatprep.subr.bf16.mxu0 %v2616_v53 }
 0x665   : > { %1615 = vmax.xlane.f32.xlu1 %v1614_v14  ;;  %v1876_v14 = vld [vmem:[%s2969_s25 + $0x28] sm:$0xff] }
 0x6f1   : > { %v1619_v15 = vpop.xlane.xlu0 %1618 }
 0x6f2   : > { %v1621_v16 = vsub.f32 %v1613_v11, %v1619_v15  ;;  %v1616_v17 = vpop.xlane.xlu1 %1615  ;;  %v1871_v11 = vld [vmem:[%s2969_s25] sm:$0xff]  ;;  %v1878_v15 = vld [vmem:[%s2969_s25 + $0x38] sm:$0xff] }
 0x6f3   : > { %v1620_v18 = vsub.f32 %v1612_v12, %v1616_v17  ;;  %v1873_v12 = vld [vmem:[%s2969_s25 + $0x10] sm:$0xff]  ;;  %v1875_v17 = vld [vmem:[%s2969_s25 + $0x20] sm:$0xff] }
 0x6f4   : > { %v1624_v19 = vmul.f32 1.442695, %v1621_v16  ;;  %v2618_v13 = vpack.c.bf16 %v1873_v12, %v1871_v11  ;;  %v2620_v16 = vpack.c.bf16 %v1878_v15, %v1876_v14 }
 0x6f5   : > { %v1622_v20 = vmul.f32 1.442695, %v1620_v18  ;;  %v1877_v18 = vld [vmem:[%s2969_s25 + $0x30] sm:$0xff] }
 0x6f6   : > { %2784 = vpow2.f32 %v1624_v19  ;;  %2619 = vmatpush1.bf16.msra.mxu0 %v2618_v13  ;;  %v2622_v19 = vpack.c.bf16 %v1877_v18, %v1875_v17 }
 0x6f7   : > { %2786 = vpow2.f32 %v1622_v20  ;;  %2621 = vmatprep.subr.bf16.mxu0 %v2620_v16  ;;  %v1880_v20 = vld [vmem:[%s2969_s25 + $0x48] sm:$0xff] }
 0x6fa   : > { %2623 = vmatpush1.bf16.msra.mxu0 %v2622_v19 }
 0x700   : > { %v2785_v21 = vpop.eup %2784 }
 0x701   : > { %v2787_v22 = vpop.eup %2786  ;;  %v1629_v51 = vsel %vm700_vm3, %v2785_v21, 0.0 }
 0x702   : > { %1630 = vadd.xlane.f32.xlu1 %v1629_v51  ;;  %v1626_v6 = vsel %vm700_vm3, %v2787_v22, 0.0  ;;  %v1879_v51 = vld [vmem:[%s2969_s25 + $0x40] sm:$0xff] }
 0x703   : > { %1627 = vadd.xlane.f32.xlu0 %v1626_v6  ;;  %v1881_v6 = vld [vmem:[%s2969_s25 + $0x50] sm:$0xff] }
 0x713   : > { %1725 = vrot.lane.b32.xlu1 %v1162_v3, %s2859_s14 }
 0x717   : > { %1727 = vrot.lane.b32.xlu1 %v2461_v2, %s2859_s14  ;;  %v2805_v2 = vld [vmem:[#allocation2] sm:$0xff] }
 0x719   : > { %2752 = vrot.lane.b32.xlu0 %v3025_v52, %s2856_s21 }
 0x71b   : > { %1735 = vrot.lane.b32.xlu1 %v2475_v4, %s2860_s20 }
 0x71d   : > { %1733 = vrot.lane.b32.xlu0 %v1438_v5, %s2860_s20 }
 0x78f   : > { %v1631_v23 = vpop.xlane.xlu1 %1630 }
 0x790   : > { %2788 = vrcp.f32 %v1631_v23  ;;  %v1628_v25 = vpop.xlane.xlu0 %1627  ;;  %v2626_v23 = vpack.c.bf16 %v1881_v6, %v1879_v51 }
 0x791   : > { %2790 = vrcp.f32 %v1628_v25  ;;  %v1884_v25 = vld [vmem:[%s2969_s25 + $0x68] sm:$0xff] }
 0x793   : > { %v1726_v42 = vpop.permute.xlu1 %1725 }
 0x794   : > { %v2753_v26 = vpop.permute.xlu0 %2752  ;;  %v1747_v47 = vsel %vm700_vm3, %v3287_v1, %v1726_v42  ;;  %v1989_v42 = vld [vmem:[%s2974_s28 + $0x18] sm:$0xff] }
 0x795   : > { %v2755_v48 = vunpack.i.h.bf16 %v2753_v26  ;;  %v2754_v28 = vunpack.i.l.bf16 %v2753_v26  ;;  %v1886_v26 = vld [vmem:[%s2969_s25 + $0x78] sm:$0xff] }
 0x797   : > { %v2596_v29 = vpack.c.bf16 %v2755_v48, %v2754_v28  ;;  %v1728_v43 = vpop.permute.xlu1 %1727  ;;  %v2628_v48 = vpack.c.bf16 %v1886_v26, %v1884_v25  ;;  %v1883_v28 = vld [vmem:[%s2969_s25 + $0x60] sm:$0xff] }
 0x798   : > { %v1734_v45 = vpop.permute.xlu0 %1733  ;;  %v1748_v56 = vsel %vm700_vm3, %v3285_v0, %v1728_v43 }
 0x799   : > { %2597 = vmatprep.subr.bf16.mxu1 %v2596_v29  ;;  %v1750_v55 = vsel %vm1749_vm5, %v1747_v47, %v1734_v45  ;;  %v1992_v47 = vld [vmem:[%s2974_s28 + $0x30] sm:$0xff] }
 0x79a   : > { %v2789_v52 = vpop.eup %2788  ;;  %2599 = vmatpush3.bf16.msra.mxu1 %v2596_v29  ;;  %v1885_v29 = vld [vmem:[%s2969_s25 + $0x70] sm:$0xff] }
 0x79b   : > { %v2791_v30 = vpop.eup %2790  ;;  %v1635_v32 = vmul.f32 %v2789_v52, %v2785_v21  ;;  %2601 = vmatprep.subr.bf16.mxu1 %v2600_v34  ;;  %v1736_v44 = vpop.permute.xlu1 %1735  ;;  %v1882_v21 = vld [vmem:[%s2969_s25 + $0x58] sm:$0xff]  ;;  %v2630_v52 = vpack.c.bf16 %v1885_v29, %v1883_v28  ;;  %v2111_v28 = vld [vmem:[%s3481_s11 + $0x8] sm:$0xff] (!%p2362_p5) }
 0x79c   : > { %v1634_v31 = vmul.f32 %v2791_v30, %v2787_v22  ;;  %v1751_v57 = vsel %vm1749_vm5, %v1748_v56, %v1736_v44  ;;  %v2624_v22 = vpack.c.bf16 %v1882_v21, %v1880_v20  ;;  %v1990_v44 = vld [vmem:[%s2974_s28 + $0x20] sm:$0xff]  ;;  %v2113_v29 = vld [vmem:[%s3481_s11 + $0x18] sm:$0xff] (!%p2362_p5) }
 0x79e   : > { %2487 = vmatprep.mubr.msk.f32.mxu1 %vm700_vm3, %v1634_v31  ;;  %2625 = vmatprep.subr.bf16.mxu0 %v2624_v22 }
 0x79f   : > { %2488 = vmatmul.mubr.msk.f32.vlgmr.msra.gmra.mrb[4].mxu1 %vm700_vm3, %v1635_v32  ;;  %2627 = vmatpush1.bf16.msra.mxu0 %v2626_v23 }
 0x7a0   : > { %2603 = vmatpush3.bf16.msra.mxu1 %v2600_v34  ;;  %2629 = vmatprep.subr.bf16.mxu0 %v2628_v48 }
 0x7a1   : > { %2605 = vmatprep.subr.bf16.mxu1 %v2604_v36 }
 0x7a3   : > { %2631 = vmatpush1.bf16.msra.mxu0 %v2630_v52  ;;  %v2664_v52 = vpack.c.bf16 (!%p2362_p5), %v2113_v29, %v2111_v28 }
 0x7a4   : > { %2607 = vmatpush3.bf16.msra.mxu1 %v2604_v36  ;;  %v2357_v36 = vld [vmem:[%s477_s19] ss:$0 sm:$0xff] }
 0x7a5   : > { %2609 = vmatprep.subr.bf16.mxu1 %v2608_v8  ;;  %2665 = vmatprep.subr.bf16.mxu0 (!%p2362_p5), %v2664_v52 }
 0x7a8   : > { %2611 = vmatpush3.bf16.msra.mxu1 %v2608_v8 }
 0x7a9   : > { %2613 = vmatprep.subr.bf16.mxu1 %v2612_v39 }
 0x7ac   : > { %2615 = vmatpush3.bf16.msra.mxu1 %v2612_v39  ;;  %v1987_v39 = vld [vmem:[%s2974_s28 + $0x8] sm:$0xff] }
 0x872   : > { %v2489_v40 = vpop.f32.mrb[4].mxu1 }
 0x873   : > { %1743 = vrot.lane.b32.xlu1 %v2489_v40, %s2862_s26  ;;  %v1714_v41 = vpop.f32.mrb[5].mxu1  ;;  %v2632_v40 = vpack.c.bf16 %v1987_v39, %v1986_v46  ;;  %v2120_v46 = vld [vmem:[%s3481_s11 + $0x50] sm:$0xff] (!%p2362_p5) }
 0x874   : > { %1741 = vrot.lane.b32.xlu0 %v1714_v41, %s2862_s26  ;;  %v1988_v41 = vld [vmem:[%s2974_s28 + $0x10] sm:$0xff] }
 0x875   : > { %2633 = vmatprep.subr.bf16.mxu1 %v2632_v40  ;;  %v2636_v43 = vpack.c.bf16 %v1989_v42, %v1988_v41  ;;  %v2125_v41 = vld [vmem:[%s3481_s11 + $0x78] sm:$0xff] (!%p2362_p5) }
 0x8e5   : > { %v1744_v50 = vpop.permute.xlu1 %1743 }
 0x8e6   : > { %v1742_v58 = vpop.permute.xlu0 %1741  ;;  %v1754_v60 = vsel %vm1752_vm6, %v1751_v57, %v1744_v50  ;;  %v1993_v50 = vld [vmem:[%s2974_s28 + $0x38] sm:$0xff] }
 0x8e7   : > { %v1753_v59 = vsel %vm1752_vm6, %v1750_v55, %v1742_v58  ;;  %v2644_v56 = vpack.c.bf16 %v1993_v50, %v1992_v47  ;;  %v1994_v55 = vld [vmem:[%s2974_s28 + $0x40] sm:$0xff]  ;;  %v1995_v58 = vld [vmem:[%s2974_s28 + $0x48] sm:$0xff] }
 0x8e8   : > { %2506 = vmatprep.mubr.msk.f32.mxu1 %vm508_vm1, %v1753_v59  ;;  %v2648_v57 = vpack.c.bf16 %v1995_v58, %v1994_v55  ;;  %v1996_v59 = vld [vmem:[%s2974_s28 + $0x50] sm:$0xff] }
 0x8e9   : > { %2507 = vmatmul.mubr.msk.f32.vlgmr.msra.gmra.mrb[6].mxu1 %vm508_vm1, %v1754_v60  ;;  %v1997_v60 = vld [vmem:[%s2974_s28 + $0x58] sm:$0xff] }
 0x8ea   : > { %2635 = vmatpush3.bf16.msra.mxu1 %v2632_v40  ;;  %v2123_v40 = vld [vmem:[%s3481_s11 + $0x68] sm:$0xff] (!%p2362_p5) }
 0x8eb   : > { %2637 = vmatprep.subr.bf16.mxu1 %v2636_v43  ;;  %v2676_v42 = vpack.c.bf16 (!%p2362_p5), %v2125_v41, %v2123_v40 }
 0x8ee   : > { %2639 = vmatpush3.bf16.msra.mxu1 %v2636_v43  ;;  %v2122_v43 = vld [vmem:[%s3481_s11 + $0x60] sm:$0xff] (!%p2362_p5) }
 0x9bc   : > { %v2508_v61 = vpop.f32.mrb[6].mxu1 }
 0x9bd   : > { %v3319_v63 = vadd.f32 %v2804_v62, %v2508_v61  ;;  %v1835_v1 = vpop.f32.mrb[7].mxu1  ;;  %v2652_v61 = vpack.c.bf16 %v1997_v60, %v1996_v59  ;;  %v1998_v62 = vld [vmem:[%s2974_s28 + $0x60] sm:$0xff] }
 0x9be   : > { %v3321_v0 = vadd.f32 %v2805_v2, %v1835_v1  ;;  %v1999_v1 = vld [vmem:[%s2974_s28 + $0x68] sm:$0xff]  ;;  %v2363_v60 = vld [vmem:[%s3480_s10] ss:$0 sm:$0xff] (!%p2362_p5) }
 0x9bf   : > { %v1848_v3 = vmul.f32 %v3319_v63, %v3319_v63  ;;  %v2656_v2 = vpack.c.bf16 %v1999_v1, %v1998_v62 }
 0x9c0   : > { %v1847_v4 = vmul.f32 %v3321_v0, %v3321_v0 }
 0x9c1   : > { %v1852_v5 = vsel %vm508_vm1, %v1848_v3, 0.0  ;;  %v2000_v3 = vld [vmem:[%s2974_s28 + $0x70] sm:$0xff] }
 0x9c2   : > { %1853 = vadd.xlane.f32.xlu1 %v1852_v5  ;;  %v1849_v7 = vsel %vm508_vm1, %v1847_v4, 0.0  ;;  %v2001_v4 = vld [vmem:[%s2974_s28 + $0x78] sm:$0xff] }
 0x9c3   : > { %1850 = vadd.xlane.f32.xlu0 %v1849_v7  ;;  %v2660_v5 = vpack.c.bf16 %v2001_v4, %v2000_v3 }
 0xa4f   : > { %v1854_v30 = vpop.xlane.xlu1 %1853 }
 0xa50   : > { %v1856_v31 = vmul.f32 0.015625, %v1854_v30  ;;  %v1851_v32 = vpop.xlane.xlu0 %1850  ;;  %v2110_v30 = vld [vmem:[%s3481_s11] sm:$0xff] (!%p2362_p5) }
 0xa51   : > { %v1855_v33 = vmul.f32 0.015625, %v1851_v32 }
 0xa52   : > { %v1858_v24 = vadd.f32 1e-05, %v1856_v31  ;;  %v2112_v31 = vld [vmem:[%s3481_s11 + $0x10] sm:$0xff] (!%p2362_p5) }
 0xa53   : > { %v1857_v49 = vadd.f32 1e-05, %v1855_v33  ;;  %v2666_v32 = vpack.c.bf16 (!%p2362_p5), %v2112_v31, %v2110_v30  ;;  %v2115_v33 = vld [vmem:[%s3481_s11 + $0x28] sm:$0xff] (!%p2362_p5) }
 0xa54   : > { %2792 = vrsqrt.f32 %v1858_v24  ;;  %v2117_v24 = vld [vmem:[%s3481_s11 + $0x38] sm:$0xff] (!%p2362_p5) }
 0xa55   : > { %2794 = vrsqrt.f32 %v1857_v49  ;;  %v2668_v49 = vpack.c.bf16 (!%p2362_p5), %v2117_v24, %v2115_v33 }
 0xa5e   : > { %v2793_v34 = vpop.eup %2792 }
 0xa5f   : > { %v2795_v35 = vpop.eup %2794  ;;  %v1862_v8 = vmul.f32 %v2793_v34, %v3319_v63  ;;  %v2114_v34 = vld [vmem:[%s3481_s11 + $0x20] sm:$0xff] (!%p2362_p5) }
 0xa60   : > { %v1861_v37 = vmul.f32 %v2795_v35, %v3321_v0  ;;  %v2116_v35 = vld [vmem:[%s3481_s11 + $0x30] sm:$0xff] (!%p2362_p5) }
 0xa61   : > { %v1870_v38 = vmul.f32 %v2357_v36, %v1862_v8 }
 0xa62   : > { %v1869_v54 = vmul.f32 %v2357_v36, %v1861_v37  ;;  %v2670_v36 = vpack.c.bf16 (!%p2362_p5), %v2116_v35, %v2114_v34  ;;  %v2119_v37 = vld [vmem:[%s3481_s11 + $0x48] sm:$0xff] (!%p2362_p5) }
 0xa64   : > { %2358 = vmatmul.mubr.msk.f32.vlgmr.msra.gmra.mrb[14].mxu0 %vm508_vm1, %v1869_v54  ;;  %v2121_v54 = vld [vmem:[%s3481_s11 + $0x58] sm:$0xff] (!%p2362_p5) }
 0xa65   : > { %1963 = vmatprep.mubr.f32.mxu0 %v2848_v27  ;;  %v1991_v27 = vld [vmem:[%s2974_s28 + $0x28] sm:$0xff]  ;;  %2667 = vmatpush1.bf16.msra.mxu0 (!%p2362_p5), %v2666_v32  ;;  %v2672_v8 = vpack.c.bf16 (!%p2362_p5), %v2121_v54, %v2119_v37 }
 0xa66   : > { %v2640_v45 = vpack.c.bf16 %v1991_v27, %v1990_v44  ;;  %2669 = vmatprep.subr.bf16.mxu0 (!%p2362_p5), %v2668_v49  ;;  %v2124_v44 = vld [vmem:[%s3481_s11 + $0x70] sm:$0xff] (!%p2362_p5) }
 0xa67   : > { %v2678_v27 = vpack.c.bf16 (!%p2362_p5), %v2124_v44, %v2122_v43 }
 0xa68   : > { %2359 = vmatmul.mubr.msk.f32.gmra.mrb[16].mxu0 %vm508_vm1, %v1870_v38  ;;  %2641 = vmatprep.subr.bf16.mxu1 %v2640_v45  ;;  %v2118_v38 = vld [vmem:[%s3481_s11 + $0x40] sm:$0xff] (!%p2362_p5) }
 0xa69   : > { %2643 = vmatpush3.bf16.msra.mxu1 %v2640_v45  ;;  %2671 = vmatpush1.bf16.msra.mxu0 (!%p2362_p5), %v2670_v36  ;;  %v2674_v39 = vpack.c.bf16 (!%p2362_p5), %v2120_v46, %v2118_v38  ;;  %v2864_v45 = vmov (!%p2362_p5), 0.0  }
 0xa6a   : > { %2645 = vmatprep.subr.bf16.mxu1 %v2644_v56  ;;  %2673 = vmatprep.subr.bf16.mxu0 (!%p2362_p5), %v2672_v8 }
 0xa6b   : > { %2196 = vmatprep.mubr.f32.mxu0 (!%p2362_p5), %v2864_v45 }
 0xa6d   : > { %2647 = vmatpush3.bf16.msra.mxu1 %v2644_v56  ;;  %2675 = vmatpush1.bf16.msra.mxu0 (!%p2362_p5), %v2674_v39 }
 0xa6e   : > { %2649 = vmatprep.subr.bf16.mxu1 %v2648_v57  ;;  %2677 = vmatprep.subr.bf16.mxu0 (!%p2362_p5), %v2676_v42 }
 0xa71   : > { %2651 = vmatpush3.bf16.msra.mxu1 %v2648_v57  ;;  %2679 = vmatpush1.bf16.msra.mxu0 (!%p2362_p5), %v2678_v27 }
 0xa72   : > { %2653 = vmatprep.subr.bf16.mxu1 %v2652_v61 }
 0xa75   : > { %2655 = vmatpush3.bf16.msra.mxu1 %v2652_v61 }
 0xa76   : > { %2657 = vmatprep.subr.bf16.mxu1 %v2656_v2 }
 0xa79   : > { %2659 = vmatpush3.bf16.msra.mxu1 %v2656_v2 }
 0xa7a   : > { %2661 = vmatprep.subr.bf16.mxu1 %v2660_v5 }
 0xa7d   : > { %2663 = vmatpush3.bf16.msra.mxu1 %v2660_v5 }
 0xa7e   : > { %2680 = vmatprep.subr.bf16.mxu1 (!%p2362_p5), %v2664_v52 }
 0xb37   : > { %v1959_v7 = vpop.f32.mrb[14].mxu0 }
 0xb38   : > { %v2360_v9 = vmul.f32 -1.442695, %v1959_v7  ;;  %v1961_v10 = vpop.f32.mrb[15].mxu0 }
 0xb3a   : > { %2796 = vpow2.f32 %v2360_v9 }
 0xb3b   : > { %v1965_v53 = vpop.f32.mrb[16].mxu0 }
 0xb3c   : > { %v2361_v11 = vmul.f32 -1.442695, %v1965_v53  ;;  %v1967_v12 = vpop.f32.mrb[17].mxu0 }
 0xb3e   : > { %2798 = vpow2.f32 %v2361_v11 }
 0xb44   : > { %v2797_v13 = vpop.eup %2796 }
 0xb45   : > { %v1976_v14 = vadd.f32 1.0, %v2797_v13 }
 0xb47   : > { %2800 = vrcp.f32 %v1976_v14 }
 0xb48   : > { %v2799_v15 = vpop.eup %2798 }
 0xb49   : > { %v1977_v16 = vadd.f32 1.0, %v2799_v15 }
 0xb4b   : > { %2802 = vrcp.f32 %v1977_v16 }
 0xb51   : > { %v2801_v17 = vpop.eup %2800 }
 0xb52   : > { %v1982_v18 = vmul.f32 %v2801_v17, %v1959_v7 }
 0xb54   : > { %v1984_v19 = vmul.f32 %v1982_v18, %v1961_v10 }
 0xb55   : > { %v2803_v20 = vpop.eup %2802 }
 0xb56   : > { %v1983_v21 = vmul.f32 %v2803_v20, %v1965_v53  ;;  %2541 = vmatprep.mubr.f32.mxu1 %v1984_v19 }
 0xb58   : > { %v1985_v22 = vmul.f32 %v1983_v21, %v1967_v12 }
 0xb5a   : > { %2542 = vmatmul.mubr.f32.vlgmr.msra.gmra.mrb[8].mxu1 %v1985_v22 }
 0xb5b   : > { %2684 = vmatpush1.bf16.msra.mxu1 (!%p2362_p5), %v2666_v32  ;;  %2202 = vmatprep.mubr.f32.mxu1 (!%p2362_p5), %v2864_v45 }
 0xb5c   : > { %2681 = vmatprep.subr.bf16.mxu1 (!%p2362_p5), %v2668_v49 }
 0xb5f   : > { %2685 = vmatpush1.bf16.msra.mxu1 (!%p2362_p5), %v2670_v36 }
 0xb60   : > { %2682 = vmatprep.subr.bf16.mxu1 (!%p2362_p5), %v2672_v8 }
 0xb63   : > { %2686 = vmatpush1.bf16.msra.mxu1 (!%p2362_p5), %v2674_v39 }
 0xb64   : > { %2683 = vmatprep.subr.bf16.mxu1 (!%p2362_p5), %v2676_v42 }
 0xb67   : > { %2687 = vmatpush1.bf16.msra.mxu1 (!%p2362_p5), %v2678_v27 }
 0xc2b   : > { %2084 = sbr.rel (%p2362_p5) target bundleno = 3503 (0xdaf), region = 76 }
 0xc2d   : > { %v2543_v51 = vpop.f32.mrb[8].mxu1 }
 0xc2e   : > { %v3372_v6 = vadd.f32 %v2543_v51, %v3319_v63  ;;  %v2068_v23 = vpop.f32.mrb[9].mxu1 }
 0xc2f   : > { %v3375_v25 = vadd.f32 %v2068_v23, %v3321_v0 }
 0xc30   : > { %2080 = vst.msk [vmem:[#allocation2 + $0x8] sm:$0xff] %vm508_vm1, %v3372_v6  ;;  %v2087_v63 = vmul.f32 (!%p2362_p5), %v3372_v6, %v3372_v6 }
 0xc31   : > { %2079 = vst.msk [vmem:[#allocation2] sm:$0xff] %vm508_vm1, %v3375_v25  ;;  %v2086_v26 = vmul.f32 (!%p2362_p5), %v3375_v25, %v3375_v25 }
 0xc32   : > { %v2091_v0 = vsel %vm508_vm1, %v2087_v63, 0.0 }
 0xc33   : > { %v2088_v48 = vsel %vm508_vm1, %v2086_v26, 0.0 }
 0xc34   : > { %2089 = vadd.xlane.f32.xlu0 %v2088_v48 }
 0xc38   : > { %2092 = vadd.xlane.f32.xlu0 %v2091_v0 }
 0xcc1   : > { %v2090_v47 = vpop.xlane.xlu0 %2089 }
 0xcc2   : > { %v2094_v50 = vmul.f32 0.015625, %v2090_v47 }
 0xcc4   : > { %v2096_v56 = vadd.f32 1e-05, %v2094_v50 }
 0xcc5   : > { %v2093_v55 = vpop.xlane.xlu0 %2092 }
 0xcc6   : > { %2806 = vrsqrt.f32 %v2096_v56  ;;  %v2095_v58 = vmul.f32 0.015625, %v2093_v55 }
 0xcc8   : > { %v2097_v57 = vadd.f32 1e-05, %v2095_v58 }
 0xcca   : > { %2808 = vrsqrt.f32 %v2097_v57 }
 0xcd0   : > { %v2807_v59 = vpop.eup %2806 }
 0xcd1   : > { %v2100_v61 = vmul.f32 %v2807_v59, %v3375_v25 }
 0xcd3   : > { %v2108_v62 = vmul.f32 %v2363_v60, %v2100_v61 }
 0xcd4   : > { %v2809_v1 = vpop.eup %2808 }
 0xcd5   : > { %v2101_v2 = vmul.f32 %v2809_v1, %v3372_v6  ;;  %2364 = vmatmul.mubr.msk.f32.vlgmr.msra.gmra.mrb[0].mxu0 %vm508_vm1, %v2108_v62 }
 0xcd7   : > { %v2109_v3 = vmul.f32 %v2363_v60, %v2101_v2 }
 0xcd9   : > { %2365 = vmatmul.mubr.msk.f32.vlgmr.msra.gmra.mrb[0].mxu1 %vm508_vm1, %v2109_v3 }
 0xda8   : > { %v2198_v4 = vpop.f32.mrb[0].mxu0 }
 0xda9   : > { %2209 = vst [vmem:[#allocation3] sm:$0xff] %v2198_v4  ;;  %v2200_v5 = vpop.f32.mrb[1].mxu0 }
 0xdaa   : > { %2210 = vst [vmem:[#allocation3 + $0x8] sm:$0xff] %v2200_v5 }
 0xdac   : > { %v2204_v7 = vpop.f32.mrb[0].mxu1 }
 0xdad   : > { %2211 = vst [vmem:[#allocation3 + $0x10] sm:$0xff] %v2204_v7  ;;  %v2206_v9 = vpop.f32.mrb[1].mxu1 }
 0xdae   : > { %2212 = vst [vmem:[#allocation3 + $0x18] sm:$0xff] %v2206_v9 }
 0xdaf PF: > { %p2692_p6 = scmp.eq.s32.totalorder %s2938_s22, 1  ;;  %s2865_s25 = smov [#allocation3]  }
 0xdb0   : > { %s2219_s28 = sshll.u32 %s2865_s25, 4  ;;  %s2220_s28 = int_to_ptr.vmem [resolvable:$true] %s2219_s28 }
 0xdb1   : > { %s2810_s30 = scalar_lea.vmem %s2220_s28, 512  ;;  %p2817_p10 = scmp.lt.s32.totalorder %s2220_s28, %s2220_s28 }
 0xdb2   : > { %p2811_p7 = scmp.ne.s32.totalorder %s2220_s28, %s2810_s30  ;;  %p2818_p11 = scmp.lt.s32.totalorder %s2810_s30, %s2810_s30 }
 0xdb4   : > { %p2812_p8 = pnand %p2811_p7, %p2692_p6  ;;  %p2819_p12 = por %p2818_p11, %p2817_p10 }
 0xdb6   : > { %p2813_p9 = pneg %p2812_p8 }
 0xdb8   : > { %p2820_p13 = pnand %p2819_p12, %p2813_p9 }
 0xdba   : > { %2823 = shalt.err (!%p2820_p13)
}
 0xdbb   : > { %s2824_s24 = scalar_lea.hbm %s3482_s12, 512 }
 0xdbc   : > { %p2825_p0 = scmp.ne.s32.totalorder %s3482_s12, %s2824_s24  ;;  %p2830_p3 = scmp.lt.u32.totalorder %s2824_s24, %s3482_s12 }
 0xdbe   : > { %p2826_p1 = pnand %p2825_p0, %p2692_p6 }
 0xdc0   : > { %p2827_p2 = pneg %p2826_p1 }
 0xdc2   : > { %p2832_p4 = pnand %p2830_p3, %p2827_p2 }
 0xdc4   : > { %2835 = shalt.err (!%p2832_p4)
}
 0xdc5   : > { %s2866_s29 = smov 256  }
 0xdc6   : > { %2689 = dma.vmem_to_hbm [thread:$0]  (%p2692_p6), %s2220_s28, 512, %s3482_s12, [#allocation4], %s2866_s29, %s2866_s29, %s2859_s14  }
 0xdc7   : > { %2841 = dma.done.wait (%p2692_p6), [#allocation4], 512  }
 0xdc8   : > { %2843 = vsyncadd (%p2692_p6), [#allocation4], 4294966784 }
 0xdc9 PF: > { %s3488_s21 = sld [smem:[#allocation6_spill]] }
 0xdcf   : > { %s23_s21 = sadd.s32 1, %s3488_s21  }
 0xdd0   : > { %p20_p5 = scmp.ge.s32.totalorder %s23_s21, 4  }
 0xdd2   :  { %22 = sbr.rel (!%p20_p5) target bundleno = 1 (0x1), region = 118 }
 0xdd9   :  { %2235 = vsyncpa [#allocation4], 1 }
 0xdda   :  { %2237 = vsyncpa [#allocation4 + $0x1], 1 }

</bundles_post_ra>
